<compile_context>
chip_gen: v7x
topology: tpu7x:2x2x1
jax: 0.10.0
libtpu: 0.0.40
codegen_flags: <defaults>
</compile_context>

<pallas_src>
from functools import partial

import jax
import jax.numpy as jnp
from jax import lax
from jax.experimental import pallas as pl
from jax.experimental.pallas import tpu as pltpu


# ----------------------------------------------------------------------------
# Pallas kernel: fused NonLocalBlock on a (TB, N, C) channel-last batch tile.
#   q/k/v projection (one fused matmul) -> N x N energy -> softmax ->
#   attention @ V -> gamma * out + x, all in VMEM, one store per step.
# ----------------------------------------------------------------------------

def _nonlocal_kernel(x_ref, w_ref, b_ref, o_ref, *, ci, gamma):
    x = x_ref[...]                                            # (TB, N, C) f32
    c = x.shape[-1]

    # One fused [V | Q | K] projection: a single MXU pass instead of three.
    y = jnp.einsum('bnc,ck->bnk', x, w_ref[...],
                   preferred_element_type=jnp.float32) + b_ref[...]
    v = y[..., :c]                                            # (TB, N, C), lane offset 0
    q = y[..., c:c + ci]                                      # (TB, N, Ci)
    k = y[..., c + ci:]                                       # (TB, N, Ci)

    # energy[b, i, j] = <q_i, k_j>  (== torch.bmm(proj_query, proj_key))
    e = jnp.einsum('bnd,bmd->bnm', q, k,
                   preferred_element_type=jnp.float32)        # (TB, N, N)

    # Row softmax; reciprocal goes to the EUP slot (free w.r.t. VALU).
    m = jnp.max(e, axis=-1, keepdims=True)
    p = jnp.exp(e - m)
    inv = pl.reciprocal(jnp.sum(p, axis=-1, keepdims=True), approx=True)
    att = p * inv

    # out[b, i, :] = sum_j att[b, i, j] * v[b, j, :]
    # (== torch.bmm(proj_value, attention.permute(0, 2, 1)) in channel-last)
    o = jnp.einsum('bnm,bmc->bnc', att, v,
                   preferred_element_type=jnp.float32)
    o_ref[...] = gamma * o + x


# ----------------------------------------------------------------------------
# Wrapper
# ----------------------------------------------------------------------------

def _pick_batch_tile(B, N, C, Ci, vmem_budget_bytes=8 << 20):
    """Largest batch tile whose f32 working set stays under the budget while
    keeping >= 2 grid steps (so v7x megacore has something to split)."""
    per_b = 4 * (2 * N * N + N * (C + 2 * Ci) + 2 * N * C)    # e, p, y, x, out
    cap = max(1, vmem_budget_bytes // max(per_b, 1))
    tb = 1
    for d in range(1, B + 1):
        if B % d == 0 and d <= cap and (B // d) >= min(2, B):
            tb = d
    return tb


def nonlocal_block_forward(x_nchw, params):
    """NonLocalBlock.forward: takes/returns NCHW (PyTorch layout)."""
    B, C, H, W = x_nchw.shape
    N = H * W
    Ci = params['wq'].shape[1]
    Ct = C + 2 * Ci

    # Channel-last flatten: (B, N, C); spatial index n == h * W + w, matching
    # torch's .view(B, C, H*W) row-major flattening.
    x_nlc = jnp.transpose(x_nchw, (0, 2, 3, 1)).reshape(B, N, C).astype(jnp.float32)

    # Fused [V | Q | K] weights / biases (value first so its slice is aligned).
    w = jnp.concatenate([params['wv'], params['wq'], params['wk']], axis=1)    # (C, Ct)
    b = jnp.concatenate([params['bv'], params['bq'], params['bk']],
                        axis=1).reshape(1, 1, Ct)                              # (1, 1, Ct)

    TB = _pick_batch_tile(B, N, C, Ci)
    # TODO(synk): for large H*W (where the N x N energy no longer fits VMEM)
    # this would additionally tile the query rows flash-attention style.
    out = pl.pallas_call(
        partial(_nonlocal_kernel, ci=Ci, gamma=float(params['gamma'])),
        grid=(B // TB,),
        in_specs=[
            pl.BlockSpec((TB, N, C), lambda i: (i, 0, 0)),
            pl.BlockSpec((C, Ct), lambda i: (0, 0)),
            pl.BlockSpec((1, 1, Ct), lambda i: (0, 0, 0)),
        ],
        out_specs=pl.BlockSpec((TB, N, C), lambda i: (i, 0, 0)),
        out_shape=jax.ShapeDtypeStruct((B, N, C), jnp.float32),
        compiler_params=pltpu.CompilerParams(
            dimension_semantics=("parallel",)),
    )(x_nlc, w, b)

    return jnp.transpose(out.reshape(B, H, W, C), (0, 3, 1, 2))


# ----------------------------------------------------------------------------
# Pure-JAX reference (for a numerical check of the fused kernel)
# ----------------------------------------------------------------------------

def _nonlocal_reference(x_nchw, params):
    B, C, H, W = x_nchw.shape
    N = H * W
    x = jnp.transpose(x_nchw, (0, 2, 3, 1)).reshape(B, N, C).astype(jnp.float32)
    hp = lax.Precision.HIGHEST
    q = jnp.einsum('bnc,ck->bnk', x, params['wq'], precision=hp) + params['bq']
    k = jnp.einsum('bnc,ck->bnk', x, params['wk'], precision=hp) + params['bk']
    v = jnp.einsum('bnc,ck->bnk', x, params['wv'], precision=hp) + params['bv']
    e = jnp.einsum('bnd,bmd->bnm', q, k, precision=hp)
    att = jax.nn.softmax(e, axis=-1)
    o = jnp.einsum('bnm,bmc->bnc', att, v, precision=hp)
    out = params['gamma'] * o + x
    return jnp.transpose(out.reshape(B, H, W, C), (0, 3, 1, 2))


# ----------------------------------------------------------------------------
# Deterministic parameter init (shapes follow the PyTorch __init__; the 1x1
# convs are represented as (Cin, Cout) matmul weights + (1, Cout) biases).
# ----------------------------------------------------------------------------

def init_params(key, planes, reduce_ratio=8):
    Ci = max(planes // reduce_ratio, 1)
    ks = jax.random.split(key, 6)
    s = 0.1

    def w(k, shape):
        return s * jax.random.normal(k, shape, jnp.float32)

    # NOTE: the PyTorch module initialises gamma to zero, which makes the block
    # an identity at init; we use a nonzero deterministic value so the fused
    # attention path is actually exercised by this test.
    return dict(
        wq=w(ks[0], (planes, Ci)), bq=w(ks[1], (1, Ci)),
        wk=w(ks[2], (planes, Ci)), bk=w(ks[3], (1, Ci)),
        wv=w(ks[4], (planes, planes)), bv=w(ks[5], (1, planes)),
        gamma=0.5,
    )


# ----------------------------------------------------------------------------

if __name__ == "__main__":
    key = jax.random.PRNGKey(0)
    k_x, k_p = jax.random.split(key)

    planes, B, H, W = 32, 2, 16, 16          # inter_planes = planes // 8 = 4
    x = jax.random.normal(k_x, (B, planes, H, W), jnp.float32)
    params = init_params(k_p, planes, reduce_ratio=8)

    out = jax.block_until_ready(nonlocal_block_forward(x, params))
    ref = jax.block_until_ready(_nonlocal_reference(x, params))

    assert out.shape == (B, planes, H, W)
    assert bool(jnp.all(jnp.isfinite(out)))
    err = float(jnp.max(jnp.abs(out - ref)))
    assert err < 1e-2, f"max abs err vs reference: {err}"
    print("KERNEL_OK")
</pallas_src>

<mosaic_0001>
module attributes {stable_mosaic.version = 11 : i64} {
  func.func @_nonlocal_kernel(%arg0: i32, %arg1: memref<1x256x32xf32, #tpu.memory_space<vmem>>, %arg2: memref<32x40xf32, #tpu.memory_space<vmem>>, %arg3: memref<1x1x40xf32, #tpu.memory_space<vmem>>, %arg4: memref<1x256x32xf32, #tpu.memory_space<vmem>>) attributes {dimension_semantics = [#tpu.dimension_semantics<parallel>], iteration_bounds = array<i64: 2>, scalar_prefetch = 0 : i64, scratch_operands = 0 : i64, tpu.core_type = #tpu.core_type<tc>, window_params = [{transform_indices = @transform_0, window_bounds = array<i64: 1, 256, 32>}, {pipeline_mode = #tpu.pipeline_mode<synchronous>, transform_indices = @transform_1, window_bounds = array<i64: 32, 40>}, {pipeline_mode = #tpu.pipeline_mode<synchronous>, transform_indices = @transform_2, window_bounds = array<i64: 1, 1, 40>}, {transform_indices = @transform_3, window_bounds = array<i64: 1, 256, 32>}]} {
    %c0 = arith.constant 0 : index
    %c0_0 = arith.constant 0 : index
    %c0_1 = arith.constant 0 : index
    %0 = vector.load %arg1[%c0, %c0_0, %c0_1] : memref<1x256x32xf32, #tpu.memory_space<vmem>>, vector<1x256x32xf32>
    %c0_2 = arith.constant 0 : index
    %c0_3 = arith.constant 0 : index
    %1 = vector.load %arg2[%c0_2, %c0_3] : memref<32x40xf32, #tpu.memory_space<vmem>>, vector<32x40xf32>
    "tpu.trace_start"() <{level = 10 : i32, message = "bnc,ck->bnk"}> : () -> ()
    %cst = arith.constant dense<0.000000e+00> : vector<1x256x40xf32>
    %2 = tpu.matmul %0, %1, %cst {dimension_numbers = #tpu.dot_dimension_numbers<[2], [0], [0, 1], [1], [0, 0, 0, 1, 1, 1], [], []>} : vector<1x256x32xf32>, vector<32x40xf32>, vector<1x256x40xf32> -> vector<1x256x40xf32>
    "tpu.trace_stop"() : () -> ()
    %c0_4 = arith.constant 0 : index
    %c0_5 = arith.constant 0 : index
    %c0_6 = arith.constant 0 : index
    %3 = vector.load %arg3[%c0_4, %c0_5, %c0_6] : memref<1x1x40xf32, #tpu.memory_space<vmem>>, vector<1x1x40xf32>
    %4 = vector.broadcast %3 : vector<1x1x40xf32> to vector<1x256x40xf32>
    %5 = arith.addf %2, %4 : vector<1x256x40xf32>
    %6 = vector.extract_strided_slice %5 {offsets = [0, 0, 0], sizes = [1, 256, 32], strides = [1, 1, 1]} : vector<1x256x40xf32> to vector<1x256x32xf32>
    %7 = vector.extract_strided_slice %5 {offsets = [0, 0, 32], sizes = [1, 256, 4], strides = [1, 1, 1]} : vector<1x256x40xf32> to vector<1x256x4xf32>
    %8 = vector.extract_strided_slice %5 {offsets = [0, 0, 36], sizes = [1, 256, 4], strides = [1, 1, 1]} : vector<1x256x40xf32> to vector<1x256x4xf32>
    "tpu.trace_start"() <{level = 10 : i32, message = "bnd,bmd->bnm"}> : () -> ()
    %cst_7 = arith.constant dense<0.000000e+00> : vector<1x256x256xf32>
    %9 = tpu.matmul %7, %8, %cst_7 {dimension_numbers = #tpu.dot_dimension_numbers<[2], [2], [1], [1], [0, 0, 0, 1, 1, 1], [0], [0]>} : vector<1x256x4xf32>, vector<1x256x4xf32>, vector<1x256x256xf32> -> vector<1x256x256xf32>
    "tpu.trace_stop"() : () -> ()
    %cst_8 = arith.constant dense<0xFF800000> : vector<1x256xf32>
    %10 = vector.multi_reduction <maximumf>, %9, %cst_8 [2] : vector<1x256x256xf32> to vector<1x256xf32>
    %11 = vector.shape_cast %10 : vector<1x256xf32> to vector<1x256x1xf32>
    %12 = vector.broadcast %11 : vector<1x256x1xf32> to vector<1x256x256xf32>
    %13 = arith.subf %9, %12 : vector<1x256x256xf32>
    %14 = math.exp %13 : vector<1x256x256xf32>
    %cst_9 = arith.constant dense<0.000000e+00> : vector<1x256xf32>
    %15 = vector.multi_reduction <add>, %14, %cst_9 [2] : vector<1x256x256xf32> to vector<1x256xf32>
    %16 = vector.shape_cast %15 : vector<1x256xf32> to vector<1x256x1xf32>
    %17 = tpu.reciprocal %16 {approx = true} : vector<1x256x1xf32> -> vector<1x256x1xf32>
    %18 = vector.broadcast %17 : vector<1x256x1xf32> to vector<1x256x256xf32>
    %19 = arith.mulf %14, %18 : vector<1x256x256xf32>
    "tpu.trace_start"() <{level = 10 : i32, message = "bnm,bmc->bnc"}> : () -> ()
    %cst_10 = arith.constant dense<0.000000e+00> : vector<1x256x32xf32>
    %20 = tpu.matmul %19, %6, %cst_10 {dimension_numbers = #tpu.dot_dimension_numbers<[2], [1], [1], [2], [0, 0, 0, 1, 1, 2], [0], [0]>} : vector<1x256x256xf32>, vector<1x256x32xf32>, vector<1x256x32xf32> -> vector<1x256x32xf32>
    "tpu.trace_stop"() : () -> ()
    %cst_11 = arith.constant 5.000000e-01 : f32
    %21 = vector.broadcast %cst_11 : f32 to vector<1x256x32xf32>
    %22 = arith.mulf %21, %20 : vector<1x256x32xf32>
    %23 = arith.addf %22, %0 : vector<1x256x32xf32>
    %c0_12 = arith.constant 0 : index
    %c0_13 = arith.constant 0 : index
    %c0_14 = arith.constant 0 : index
    %24 = vector.load %arg4[%c0_12, %c0_13, %c0_14] : memref<1x256x32xf32, #tpu.memory_space<vmem>>, vector<1x256x32xf32>
    tpu.vector_store %arg4[%c0_12, %c0_13, %c0_14], %23 {strides = array<i32>} : memref<1x256x32xf32, #tpu.memory_space<vmem>>, vector<1x256x32xf32>,
    return
  }
  func.func @transform_0(%arg0: i32) -> (i32, i32, i32) {
    %c0_i32 = arith.constant 0 : i32
    %c0_i32_0 = arith.constant 0 : i32
    %c0_i32_1 = arith.constant 0 : i32
    return %arg0, %c0_i32, %c0_i32_0 : i32, i32, i32
  }
  func.func @transform_1(%arg0: i32) -> (i32, i32) {
    %c0_i32 = arith.constant 0 : i32
    %c0_i32_0 = arith.constant 0 : i32
    %c0_i32_1 = arith.constant 0 : i32
    return %c0_i32, %c0_i32_0 : i32, i32
  }
  func.func @transform_2(%arg0: i32) -> (i32, i32, i32) {
    %c0_i32 = arith.constant 0 : i32
    %c0_i32_0 = arith.constant 0 : i32
    %c0_i32_1 = arith.constant 0 : i32
    %c0_i32_2 = arith.constant 0 : i32
    return %c0_i32, %c0_i32_0, %c0_i32_1 : i32, i32, i32
  }
  func.func @transform_3(%arg0: i32) -> (i32, i32, i32) {
    %c0_i32 = arith.constant 0 : i32
    %c0_i32_0 = arith.constant 0 : i32
    %c0_i32_1 = arith.constant 0 : i32
    return %arg0, %c0_i32, %c0_i32_0 : i32, i32, i32
  }
}

</mosaic_0001>

<bundles_post_ra>
// kernel: tpu_custom_call.1
= control target key start
LH: loop header
LB: loop body
LE: loop exit
PB: predicated region body
PF: predicated region fallthrough
CT: control target
= control target key end

     0   :  { %s2718_s12 = smov 0   ;;  %s3851_s0 = inlined_call_operand.vmem [shape: f32[2,256,32], index: 0, kind: input, shape index: {}]   ;;  %s3852_s1 = inlined_call_operand.vmem [shape: f32[32,40], index: 1, kind: input, shape index: {}]   ;;  %s3853_s2 = inlined_call_operand.vmem [shape: f32[1,1,40], index: 2, kind: input, shape index: {}]   ;;  %s3854_s3 = inlined_call_operand.vmem [shape: f32[2,256,32], index: 3, kind: output, shape index: {}]  }
   0x1 LB: > { %s1938_s13 = sadd.s32 4294967295, %s2693_s12   ;;  %p1942_p0 = scmp.ge.s32.totalorder %s2693_s12, 1  ;;  %s2693_s12 = sphi %s2718_s12, %s13_s12  }
   0x2   : > { %p137_p1 = scmp.lt.s32.totalorder %s2693_s12, 3 }
   0x4   : > { %p138_p2 = pnand %p1942_p0, %p137_p1 }
   0x6   : > { %141 = sbr.rel (%p138_p2) target bundleno = 1399 (0x577), region = 32 }
   0xd   : > { %v203_v0 = vld [vmem:[%s3852_s1] sm:$0xff]  ;;  %v204_v1 = vld [vmem:[%s3852_s1 + $0x8] sm:$0xff]  ;;  %v205_v2 = vld [vmem:[%s3852_s1 + $0x10] sm:$0xff]  ;;  %p161_p3 = scmp.lt.s32.totalorder %s1938_s13, 1  ;;  %vm214_vm0 = vcmask 261120   ;;  %v2695_v38 = vmov 0.0|0.0  }
   0xe   : > { %v2236_v3 = vpack.c.bf16 %v204_v1, %v203_v0  ;;  %v206_v4 = vld [vmem:[%s3852_s1 + $0x18] sm:$0xff]  ;;  %v2816_v39 = vld [vmem:[%s3853_s2] ss:$0 sm:$0xff]  ;;  %s2696_s28 = smov 92   ;;  %s2697_s29 = smov 96   ;;  %vm696_vm1 = vcmask 31744  }
   0xf   : > { %v2240_v5 = vpack.c.bf16 %v206_v4, %v205_v2  ;;  %s3931_s13 = smov (!%p161_p3, %s1938_s13), 1  ;;  %vm3098_vm2 = vmpackc.low %vm696_vm1, %vm696_vm1 }
  0x10   : > { %2237 = vmatprep.subr.bf16.mxu0 %v2236_v3  ;;  %s2046_s22 = sshll.u32 %s3931_s13, 8 }
  0x11   : > { %2239 = vmatpush3.bf16.msra.mxu0 %v2236_v3  ;;  %s2746_s25 = scalar_lea.vmem %s3851_s0, %s2046_s22  ;;  %s3750_s5 = scalar_lea.vmem %s3854_s3, %s2046_s22 }
  0x12   : > { %2241 = vmatprep.subr.bf16.mxu0 %v2240_v5  ;;  %v171_v6 = vld [vmem:[%s2746_s25] sm:$0xff]  ;;  %v172_v7 = vld [vmem:[%s2746_s25 + $0x8] sm:$0xff]  ;;  %v173_v8 = vld [vmem:[%s2746_s25 + $0x10] sm:$0xff] }
  0x13   : > { %2188 = vmatprep.mubr.msk.f32.mxu0 %vm214_vm0, %v171_v6  ;;  %v174_v9 = vld [vmem:[%s2746_s25 + $0x18] sm:$0xff]  ;;  %v175_v10 = vld [vmem:[%s2746_s25 + $0x20] sm:$0xff]  ;;  %v176_v11 = vld [vmem:[%s2746_s25 + $0x28] sm:$0xff] }
  0x14   : > { %v177_v12 = vld [vmem:[%s2746_s25 + $0x30] sm:$0xff]  ;;  %v178_v13 = vld [vmem:[%s2746_s25 + $0x38] sm:$0xff]  ;;  %v179_v14 = vld [vmem:[%s2746_s25 + $0x40] sm:$0xff] }
  0x15   : > { %2243 = vmatpush3.bf16.msra.mxu0 %v2240_v5  ;;  %v180_v15 = vld [vmem:[%s2746_s25 + $0x48] sm:$0xff]  ;;  %v181_v16 = vld [vmem:[%s2746_s25 + $0x50] sm:$0xff]  ;;  %v182_v17 = vld [vmem:[%s2746_s25 + $0x58] sm:$0xff] }
  0x16   : > { %v183_v18 = vld [vmem:[%s2746_s25 + $0x60] sm:$0xff]  ;;  %v184_v19 = vld [vmem:[%s2746_s25 + $0x68] sm:$0xff]  ;;  %v185_v20 = vld [vmem:[%s2746_s25 + $0x70] sm:$0xff]  ;;  %2292 = vmatprep.subr.bf16.mxu0 %v2695_v38 }
  0x17   : > { %v186_v21 = vld [vmem:[%s2746_s25 + $0x78] sm:$0xff]  ;;  %v187_v22 = vld [vmem:[%s2746_s25 + $0x80] sm:$0xff]  ;;  %v188_v23 = vld [vmem:[%s2746_s25 + $0x88] sm:$0xff] }
  0x18   : > { %2189 = vmatmul.mubr.msk.f32.vlgmr.msra.gmra.mrb[0].mxu0 %vm214_vm0, %v172_v7  ;;  %v189_v24 = vld [vmem:[%s2746_s25 + $0x90] sm:$0xff]  ;;  %v190_v25 = vld [vmem:[%s2746_s25 + $0x98] sm:$0xff]  ;;  %v191_v26 = vld [vmem:[%s2746_s25 + $0xa0] sm:$0xff] }
  0x19   : > { %2191 = vmatprep.mubr.msk.f32.mxu0 %vm214_vm0, %v173_v8  ;;  %v192_v27 = vld [vmem:[%s2746_s25 + $0xa8] sm:$0xff]  ;;  %v193_v28 = vld [vmem:[%s2746_s25 + $0xb0] sm:$0xff]  ;;  %v194_v29 = vld [vmem:[%s2746_s25 + $0xb8] sm:$0xff] }
  0x1a   : > { %v195_v30 = vld [vmem:[%s2746_s25 + $0xc0] sm:$0xff]  ;;  %v196_v31 = vld [vmem:[%s2746_s25 + $0xc8] sm:$0xff]  ;;  %v197_v32 = vld [vmem:[%s2746_s25 + $0xd0] sm:$0xff] }
  0x1b   : > { %v198_v33 = vld [vmem:[%s2746_s25 + $0xd8] sm:$0xff]  ;;  %v199_v34 = vld [vmem:[%s2746_s25 + $0xe0] sm:$0xff]  ;;  %v200_v35 = vld [vmem:[%s2746_s25 + $0xe8] sm:$0xff] }
  0x1c   : > { %2192 = vmatmul.mubr.msk.f32.gmra.mrb[2].mxu0 %vm214_vm0, %v174_v9  ;;  %v201_v36 = vld [vmem:[%s2746_s25 + $0xf0] sm:$0xff]  ;;  %v202_v37 = vld [vmem:[%s2746_s25 + $0xf8] sm:$0xff] }
  0x1d   : > { %2194 = vmatprep.mubr.msk.f32.mxu0 %vm214_vm0, %v175_v10 }
  0x20   : > { %2195 = vmatmul.mubr.msk.f32.gmra.mrb[4].mxu0 %vm214_vm0, %v176_v11 }
  0x21   : > { %2197 = vmatprep.mubr.msk.f32.mxu0 %vm214_vm0, %v177_v12 }
  0x24   : > { %2198 = vmatmul.mubr.msk.f32.gmra.mrb[6].mxu0 %vm214_vm0, %v178_v13 }
  0x25   : > { %2200 = vmatprep.mubr.msk.f32.mxu0 %vm214_vm0, %v179_v14 }
  0x28   : > { %2201 = vmatmul.mubr.msk.f32.gmra.mrb[8].mxu0 %vm214_vm0, %v180_v15 }
  0x29   : > { %2203 = vmatprep.mubr.msk.f32.mxu0 %vm214_vm0, %v181_v16 }
  0x2c   : > { %2204 = vmatmul.mubr.msk.f32.gmra.mrb[10].mxu0 %vm214_vm0, %v182_v17 }
  0x2d   : > { %2206 = vmatprep.mubr.msk.f32.mxu0 %vm214_vm0, %v183_v18 }
  0x30   : > { %2207 = vmatmul.mubr.msk.f32.gmra.mrb[12].mxu0 %vm214_vm0, %v184_v19 }
  0x31   : > { %2209 = vmatprep.mubr.msk.f32.mxu0 %vm214_vm0, %v185_v20 }
  0x34   : > { %2210 = vmatmul.mubr.msk.f32.gmra.mrb[14].mxu0 %vm214_vm0, %v186_v21 }
  0x35   : > { %2212 = vmatprep.mubr.msk.f32.mxu0 %vm214_vm0, %v187_v22 }
  0x38   : > { %2213 = vmatmul.mubr.msk.f32.gmra.mrb[16].mxu0 %vm214_vm0, %v188_v23 }
  0x39   : > { %2215 = vmatprep.mubr.msk.f32.mxu0 %vm214_vm0, %v189_v24 }
  0x3c   : > { %2216 = vmatmul.mubr.msk.f32.gmra.mrb[18].mxu0 %vm214_vm0, %v190_v25 }
  0x3d   : > { %2218 = vmatprep.mubr.msk.f32.mxu0 %vm214_vm0, %v191_v26 }
  0x40   : > { %2219 = vmatmul.mubr.msk.f32.gmra.mrb[20].mxu0 %vm214_vm0, %v192_v27 }
  0x41   : > { %2221 = vmatprep.mubr.msk.f32.mxu0 %vm214_vm0, %v193_v28 }
  0x44   : > { %2222 = vmatmul.mubr.msk.f32.gmra.mrb[22].mxu0 %vm214_vm0, %v194_v29 }
  0x45   : > { %2224 = vmatprep.mubr.msk.f32.mxu0 %vm214_vm0, %v195_v30 }
  0x48   : > { %2225 = vmatmul.mubr.msk.f32.gmra.mrb[24].mxu0 %vm214_vm0, %v196_v31 }
  0x49   : > { %2227 = vmatprep.mubr.msk.f32.mxu0 %vm214_vm0, %v197_v32 }
  0x4c   : > { %2228 = vmatmul.mubr.msk.f32.gmra.mrb[26].mxu0 %vm214_vm0, %v198_v33 }
  0x4d   : > { %2230 = vmatprep.mubr.msk.f32.mxu0 %vm214_vm0, %v199_v34 }
  0x50   : > { %2231 = vmatmul.mubr.msk.f32.gmra.mrb[28].mxu0 %vm214_vm0, %v200_v35 }
  0x51   : > { %2233 = vmatprep.mubr.msk.f32.mxu0 %vm214_vm0, %v201_v36 }
  0x54   : > { %2234 = vmatmul.mubr.msk.f32.gmra.mrb[30].mxu0 %vm214_vm0, %v202_v37 }
  0xeb   : > { %v2190_v40 = vpop.f32.mrb[0].mxu0 }
  0xec   : > { %v2819_v41 = vadd.f32 %v2190_v40, %v2816_v39  ;;  %v377_v42 = vpop.f32.mrb[1].mxu0 }
  0xed   : > { %v2822_v43 = vadd.f32 %v2816_v39, %v377_v42 }
  0xef   : > { %v2826_v44 = vpack.c.bf16 %v2819_v41, %v2822_v43  ;;  %v2193_v45 = vpop.f32.mrb[2].mxu0  ;;  %v2388_v29 = vpack.i.bf16 %v2819_v41, %v2822_v43 }
  0xf0   : > { %v2829_v46 = vadd.f32 %v2193_v45, %v2816_v39  ;;  %v387_v47 = vpop.f32.mrb[3].mxu0 }
  0xf1   : > { %v2832_v48 = vadd.f32 %v2816_v39, %v387_v47  ;;  %2294 = vmatpush1.bf16.msra.mxu0 %v2826_v44 }
  0xf2   : > { %2295 = vmatprep.subr.bf16.mxu0 %v2695_v38 }
  0xf3   : > { %v2838_v49 = vpack.c.bf16 %v2829_v46, %v2832_v48  ;;  %v2196_v50 = vpop.f32.mrb[4].mxu0  ;;  %v2398_v35 = vpack.i.bf16 %v2829_v46, %v2832_v48 }
  0xf4   : > { %v2841_v51 = vadd.f32 %v2196_v50, %v2816_v39  ;;  %v397_v52 = vpop.f32.mrb[5].mxu0 }
  0xf5   : > { %v2844_v53 = vadd.f32 %v2816_v39, %v397_v52  ;;  %2297 = vmatpush1.bf16.msra.mxu0 %v2838_v49 }
  0xf6   : > { %2298 = vmatprep.subr.bf16.mxu0 %v2695_v38 }
  0xf7   : > { %v2850_v54 = vpack.c.bf16 %v2841_v51, %v2844_v53  ;;  %v2199_v55 = vpop.f32.mrb[6].mxu0  ;;  %v2408_v50 = vpack.i.bf16 %v2841_v51, %v2844_v53 }
  0xf8   : > { %v2853_v56 = vadd.f32 %v2199_v55, %v2816_v39  ;;  %v407_v57 = vpop.f32.mrb[7].mxu0 }
  0xf9   : > { %v2856_v58 = vadd.f32 %v2816_v39, %v407_v57  ;;  %2300 = vmatpush1.bf16.msra.mxu0 %v2850_v54 }
  0xfa   : > { %2301 = vmatprep.subr.bf16.mxu0 %v2695_v38 }
  0xfb   : > { %v2862_v59 = vpack.c.bf16 %v2853_v56, %v2856_v58  ;;  %v2202_v60 = vpop.f32.mrb[8].mxu0 }
  0xfc   : > { %v2865_v61 = vadd.f32 %v2202_v60, %v2816_v39  ;;  %v417_v62 = vpop.f32.mrb[9].mxu0 }
  0xfd   : > { %v2868_v63 = vadd.f32 %v2816_v39, %v417_v62  ;;  %2303 = vmatpush1.bf16.msra.mxu0 %v2862_v59 }
  0xfe   : > { %2304 = vmatprep.subr.bf16.mxu0 %v2695_v38 }
  0xff   : > { %v2874_v0 = vpack.c.bf16 %v2865_v61, %v2868_v63  ;;  %v2205_v1 = vpop.f32.mrb[10].mxu0 }
 0x100   : > { %v2877_v2 = vadd.f32 %v2205_v1, %v2816_v39  ;;  %v427_v3 = vpop.f32.mrb[11].mxu0 }
 0x101   : > { %v2880_v4 = vadd.f32 %v2816_v39, %v427_v3  ;;  %2306 = vmatpush1.bf16.msra.mxu0 %v2874_v0  ;;  %v2418_v3 = vpack.i.bf16 %v2853_v56, %v2856_v58 }
 0x102   : > { %2307 = vmatprep.subr.bf16.mxu0 %v2695_v38 }
 0x103   : > { %v2886_v5 = vpack.c.bf16 %v2877_v2, %v2880_v4  ;;  %v2208_v6 = vpop.f32.mrb[12].mxu0 }
 0x104   : > { %v2889_v7 = vadd.f32 %v2208_v6, %v2816_v39  ;;  %v437_v8 = vpop.f32.mrb[13].mxu0 }
 0x105   : > { %v2892_v9 = vadd.f32 %v2816_v39, %v437_v8  ;;  %2309 = vmatpush1.bf16.msra.mxu0 %v2886_v5 }
 0x106   : > { %2310 = vmatprep.subr.bf16.mxu0 %v2695_v38 }
 0x107   : > { %v2898_v10 = vpack.c.bf16 %v2889_v7, %v2892_v9  ;;  %v2211_v11 = vpop.f32.mrb[14].mxu0 }
 0x108   : > { %v2901_v12 = vadd.f32 %v2211_v11, %v2816_v39  ;;  %v447_v13 = vpop.f32.mrb[15].mxu0 }
 0x109   : > { %v2904_v14 = vadd.f32 %v2816_v39, %v447_v13  ;;  %2312 = vmatpush1.bf16.msra.mxu0 %v2898_v10 }
 0x10a   : > { %2313 = vmatprep.subr.bf16.mxu0 %v2695_v38 }
 0x10b   : > { %v2910_v15 = vpack.c.bf16 %v2901_v12, %v2904_v14  ;;  %v2214_v16 = vpop.f32.mrb[16].mxu0 }
 0x10c   : > { %v2913_v17 = vadd.f32 %v2214_v16, %v2816_v39  ;;  %v457_v18 = vpop.f32.mrb[17].mxu0 }
 0x10d   : > { %v2916_v19 = vadd.f32 %v2816_v39, %v457_v18  ;;  %2315 = vmatpush1.bf16.msra.mxu0 %v2910_v15 }
 0x10e   : > { %2316 = vmatprep.subr.bf16.mxu0 %v2695_v38 }
 0x10f   : > { %v2922_v20 = vpack.c.bf16 %v2913_v17, %v2916_v19  ;;  %v2217_v21 = vpop.f32.mrb[18].mxu0  ;;  %v2383_v22 = vpack.i.bf16 %v2913_v17, %v2916_v19 }
 0x110   : > { %v2927_v23 = vadd.f32 %v2217_v21, %v2816_v39  ;;  %v467_v24 = vpop.f32.mrb[19].mxu0  ;;  %v2428_v21 = vpack.i.bf16 %v2865_v61, %v2868_v63 }
 0x111   : > { %v2930_v25 = vadd.f32 %v2816_v39, %v467_v24  ;;  %2384 = vrot.lane.b32.xlu0 %v2383_v22, %s2696_s28  ;;  %2318 = vmatpush1.bf16.msra.mxu0 %v2922_v20 }
 0x112   : > { %2319 = vmatprep.subr.bf16.mxu0 %v2695_v38 }
 0x113   : > { %v2937_v26 = vpack.c.bf16 %v2927_v23, %v2930_v25  ;;  %v2220_v27 = vpop.f32.mrb[20].mxu0  ;;  %v2393_v28 = vpack.i.bf16 %v2927_v23, %v2930_v25 }
 0x114   : > { %v2944_v30 = vadd.f32 %v2220_v27, %v2816_v39  ;;  %v477_v31 = vpop.f32.mrb[21].mxu0 }
 0x115   : > { %v2947_v32 = vadd.f32 %v2816_v39, %v477_v31  ;;  %2394 = vrot.lane.b32.xlu1 %v2393_v28, %s2696_s28  ;;  %2389 = vrot.lane.b32.xlu0 %v2388_v29, %s2696_s28 }
 0x116   : > { %2321 = vmatpush1.bf16.msra.mxu0 %v2937_v26 }
 0x117   : > { %v2954_v33 = vpack.c.bf16 %v2944_v30, %v2947_v32  ;;  %v2223_v34 = vpop.f32.mrb[22].mxu0  ;;  %v2403_v36 = vpack.i.bf16 %v2944_v30, %v2947_v32  ;;  %2322 = vmatprep.subr.bf16.mxu0 %v2695_v38 }
 0x118   : > { %v2962_v37 = vadd.f32 %v2223_v34, %v2816_v39  ;;  %v487_v40 = vpop.f32.mrb[23].mxu0  ;;  %v2438_v34 = vpack.i.bf16 %v2877_v2, %v2880_v4 }
 0x119   : > { %v2965_v42 = vadd.f32 %v2816_v39, %v487_v40  ;;  %2399 = vrot.lane.b32.xlu1 %v2398_v35, %s2696_s28  ;;  %2404 = vrot.lane.b32.xlu0 %v2403_v36, %s2696_s28 }
 0x11a   : > { %2324 = vmatpush1.bf16.msra.mxu0 %v2954_v33 }
 0x11b   : > { %v2972_v45 = vpack.c.bf16 %v2962_v37, %v2965_v42  ;;  %v2226_v47 = vpop.f32.mrb[24].mxu0  ;;  %v2413_v52 = vpack.i.bf16 %v2962_v37, %v2965_v42  ;;  %2325 = vmatprep.subr.bf16.mxu0 %v2695_v38 }
 0x11c   : > { %v2980_v55 = vadd.f32 %v2226_v47, %v2816_v39  ;;  %v497_v57 = vpop.f32.mrb[25].mxu0 }
 0x11d   : > { %v2983_v60 = vadd.f32 %v2816_v39, %v497_v57  ;;  %2409 = vrot.lane.b32.xlu1 %v2408_v50, %s2696_s28  ;;  %2414 = vrot.lane.b32.xlu0 %v2413_v52, %s2696_s28  ;;  %v2448_v52 = vpack.i.bf16 %v2889_v7, %v2892_v9 }
 0x11e   : > { %2327 = vmatpush1.bf16.msra.mxu0 %v2972_v45 }
 0x11f   : > { %v2990_v62 = vpack.c.bf16 %v2980_v55, %v2983_v60  ;;  %v2229_v1 = vpop.f32.mrb[26].mxu0  ;;  %v2423_v6 = vpack.i.bf16 %v2980_v55, %v2983_v60  ;;  %2328 = vmatprep.subr.bf16.mxu0 %v2695_v38 }
 0x120   : > { %v2998_v8 = vadd.f32 %v2229_v1, %v2816_v39  ;;  %v507_v11 = vpop.f32.mrb[27].mxu0 }
 0x121   : > { %v508_v13 = vadd.f32 %v2816_v39, %v507_v11  ;;  %2419 = vrot.lane.b32.xlu1 %v2418_v3, %s2696_s28  ;;  %2424 = vrot.lane.b32.xlu0 %v2423_v6, %s2696_s28 }
 0x122   : > { %2330 = vmatpush1.bf16.msra.mxu0 %v2990_v62 }
 0x123   : > { %v3005_v16 = vpack.c.bf16 %v2998_v8, %v508_v13  ;;  %v2232_v18 = vpop.f32.mrb[28].mxu0  ;;  %v2433_v22 = vpack.i.bf16 %v2998_v8, %v508_v13  ;;  %2331 = vmatprep.subr.bf16.mxu0 %v2695_v38 }
 0x124   : > { %v523_v24 = vadd.f32 %v2232_v18, %v2816_v39  ;;  %v517_v27 = vpop.f32.mrb[29].mxu0 }
 0x125   : > { %v518_v28 = vadd.f32 %v2816_v39, %v517_v27  ;;  %2429 = vrot.lane.b32.xlu1 %v2428_v21, %s2696_s28  ;;  %2434 = vrot.lane.b32.xlu0 %v2433_v22, %s2696_s28 }
 0x126   : > { %2333 = vmatpush1.bf16.msra.mxu0 %v3005_v16 }
 0x127   : > { %v3016_v29 = vpack.c.bf16 %v523_v24, %v518_v28  ;;  %v2235_v31 = vpop.f32.mrb[30].mxu0  ;;  %v2443_v35 = vpack.i.bf16 %v523_v24, %v518_v28  ;;  %2334 = vmatprep.subr.bf16.mxu0 %v2695_v38 }
 0x128   : > { %v533_v36 = vadd.f32 %v2235_v31, %v2816_v39  ;;  %v527_v40 = vpop.f32.mrb[31].mxu0 }
 0x129   : > { %v528_v47 = vadd.f32 %v2816_v39, %v527_v40  ;;  %2439 = vrot.lane.b32.xlu1 %v2438_v34, %s2696_s28  ;;  %2444 = vrot.lane.b32.xlu0 %v2443_v35, %s2696_s28  ;;  %v2458_v39 = vpack.i.bf16 %v2901_v12, %v2904_v14 }
 0x12a   : > { %2336 = vmatpush1.bf16.msra.mxu0 %v3016_v29 }
 0x12b   : > { %v3026_v50 = vpack.c.bf16 %v533_v36, %v528_v47  ;;  %v2453_v57 = vpack.i.bf16 %v533_v36, %v528_v47  ;;  %2337 = vmatprep.subr.bf16.mxu0 %v2695_v38 }
 0x12d   : > { %2449 = vrot.lane.b32.xlu1 %v2448_v52, %s2696_s28  ;;  %2454 = vrot.lane.b32.xlu0 %v2453_v57, %s2696_s28 }
 0x12e   : > { %2339 = vmatpush1.bf16.msra.mxu0 %v3026_v50 }
 0x131   : > { %2459 = vrot.lane.b32.xlu1 %v2458_v39, %s2696_s28  ;;  %568 = vrot.lane.b32.xlu0 %v2822_v43, %s2697_s29 }
 0x135   : > { %570 = vrot.lane.b32.xlu1 %v2819_v41, %s2697_s29  ;;  %572 = vrot.lane.b32.xlu0 %v2832_v48, %s2697_s29 }
 0x139   : > { %574 = vrot.lane.b32.xlu1 %v2829_v46, %s2697_s29  ;;  %576 = vrot.lane.b32.xlu0 %v2844_v53, %s2697_s29 }
 0x13d   : > { %578 = vrot.lane.b32.xlu1 %v2841_v51, %s2697_s29  ;;  %580 = vrot.lane.b32.xlu0 %v2856_v58, %s2697_s29 }
 0x141   : > { %582 = vrot.lane.b32.xlu1 %v2853_v56, %s2697_s29  ;;  %584 = vrot.lane.b32.xlu0 %v2868_v63, %s2697_s29 }
 0x145   : > { %586 = vrot.lane.b32.xlu1 %v2865_v61, %s2697_s29  ;;  %588 = vrot.lane.b32.xlu0 %v2880_v4, %s2697_s29 }
 0x149   : > { %590 = vrot.lane.b32.xlu1 %v2877_v2, %s2697_s29  ;;  %592 = vrot.lane.b32.xlu0 %v2892_v9, %s2697_s29 }
 0x14d   : > { %594 = vrot.lane.b32.xlu1 %v2889_v7, %s2697_s29  ;;  %596 = vrot.lane.b32.xlu0 %v2904_v14, %s2697_s29 }
 0x151   : > { %598 = vrot.lane.b32.xlu1 %v2901_v12, %s2697_s29  ;;  %600 = vrot.lane.b32.xlu0 %v2916_v19, %s2697_s29 }
 0x155   : > { %602 = vrot.lane.b32.xlu1 %v2913_v17, %s2697_s29  ;;  %604 = vrot.lane.b32.xlu0 %v2930_v25, %s2697_s29 }
 0x159   : > { %606 = vrot.lane.b32.xlu1 %v2927_v23, %s2697_s29  ;;  %608 = vrot.lane.b32.xlu0 %v2947_v32, %s2697_s29 }
 0x15d   : > { %610 = vrot.lane.b32.xlu1 %v2944_v30, %s2697_s29  ;;  %612 = vrot.lane.b32.xlu0 %v2965_v42, %s2697_s29 }
 0x161   : > { %614 = vrot.lane.b32.xlu1 %v2962_v37, %s2697_s29  ;;  %616 = vrot.lane.b32.xlu0 %v2983_v60, %s2697_s29 }
 0x165   : > { %618 = vrot.lane.b32.xlu1 %v2980_v55, %s2697_s29  ;;  %620 = vrot.lane.b32.xlu0 %v508_v13, %s2697_s29 }
 0x169   : > { %622 = vrot.lane.b32.xlu1 %v2998_v8, %s2697_s29  ;;  %624 = vrot.lane.b32.xlu0 %v518_v28, %s2697_s29 }
 0x16d   : > { %626 = vrot.lane.b32.xlu1 %v523_v24, %s2697_s29  ;;  %628 = vrot.lane.b32.xlu0 %v528_v47, %s2697_s29 }
 0x171   : > { %630 = vrot.lane.b32.xlu1 %v533_v36, %s2697_s29 }
 0x183   : > { %v2385_v41 = vpop.permute.xlu0 %2384 }
 0x184   : > { %v2387_v43 = vunpack.i.h.bf16 %v2385_v41  ;;  %v2386_v46 = vunpack.i.l.bf16 %v2385_v41 }
 0x186   : > { %v2244_v51 = vpack.c.bf16 %v2387_v43, %v2386_v46 }
 0x187   : > { %v2395_v53 = vpop.permute.xlu1 %2394  ;;  %v2390_v56 = vpop.permute.xlu0 %2389 }
 0x188   : > { %v2397_v58 = vunpack.i.h.bf16 %v2395_v53  ;;  %v2396_v61 = vunpack.i.l.bf16 %v2395_v53  ;;  %v2392_v63 = vunpack.i.h.bf16 %v2390_v56  ;;  %v2391_v2 = vunpack.i.l.bf16 %v2390_v56  ;;  %2246 = vmatprep.subr.msk.bf16.mxu1 %vm3098_vm2, %v2244_v51 }
 0x18a   : > { %v2250_v4 = vpack.c.bf16 %v2397_v58, %v2396_v61  ;;  %v2247_v7 = vpack.c.bf16 %v2392_v63, %v2391_v2 }
 0x18b   : > { %v2400_v9 = vpop.permute.xlu1 %2399  ;;  %v2405_v12 = vpop.permute.xlu0 %2404 }
 0x18c   : > { %2249 = vmatpush3.bf16.xpose.msk.msra.mxu1 %vm3098_vm2, %v2247_v7  ;;  %v2407_v14 = vunpack.i.h.bf16 %v2405_v12  ;;  %v2406_v17 = vunpack.i.l.bf16 %v2405_v12  ;;  %v2402_v19 = vunpack.i.h.bf16 %v2400_v9  ;;  %v2401_v23 = vunpack.i.l.bf16 %v2400_v9 }
 0x18d   : > { %2252 = vmatprep.subr.msk.bf16.mxu1 %vm3098_vm2, %v2250_v4 }
 0x18e   : > { %v2256_v30 = vpack.c.bf16 %v2407_v14, %v2406_v17  ;;  %v2253_v32 = vpack.c.bf16 %v2402_v19, %v2401_v23 }
 0x18f   : > { %v2415_v25 = vpop.permute.xlu0 %2414  ;;  %v2410_v37 = vpop.permute.xlu1 %2409 }
 0x190   : > { %v2417_v55 = vunpack.i.h.bf16 %v2415_v25  ;;  %v2416_v60 = vunpack.i.l.bf16 %v2415_v25  ;;  %v2412_v1 = vunpack.i.h.bf16 %v2410_v37  ;;  %v2411_v3 = vunpack.i.l.bf16 %v2410_v37 }
 0x192   : > { %v2262_v8 = vpack.c.bf16 %v2417_v55, %v2416_v60  ;;  %v2259_v11 = vpack.c.bf16 %v2412_v1, %v2411_v3 }
 0x193   : > { %v2425_v42 = vpop.permute.xlu0 %2424  ;;  %v2420_v13 = vpop.permute.xlu1 %2419 }
 0x194   : > { %2255 = vmatpush3.bf16.xpose.msk.msra.mxu1 %vm3098_vm2, %v2253_v32  ;;  %v2427_v21 = vunpack.i.h.bf16 %v2425_v42  ;;  %v2426_v22 = vunpack.i.l.bf16 %v2425_v42  ;;  %v2422_v24 = vunpack.i.h.bf16 %v2420_v13  ;;  %v2421_v27 = vunpack.i.l.bf16 %v2420_v13 }
 0x195   : > { %2258 = vmatprep.subr.msk.bf16.mxu1 %vm3098_vm2, %v2256_v30 }
 0x196   : > { %v2268_v31 = vpack.c.bf16 %v2427_v21, %v2426_v22  ;;  %v2265_v34 = vpack.c.bf16 %v2422_v24, %v2421_v27 }
 0x197   : > { %v2435_v6 = vpop.permute.xlu0 %2434  ;;  %v2430_v35 = vpop.permute.xlu1 %2429 }
 0x198   : > { %v2437_v40 = vunpack.i.h.bf16 %v2435_v6  ;;  %v2436_v47 = vunpack.i.l.bf16 %v2435_v6  ;;  %v2432_v52 = vunpack.i.h.bf16 %v2430_v35  ;;  %v2431_v57 = vunpack.i.l.bf16 %v2430_v35 }
 0x19a   : > { %v2274_v39 = vpack.c.bf16 %v2437_v40, %v2436_v47  ;;  %v2271_v41 = vpack.c.bf16 %v2432_v52, %v2431_v57 }
 0x19b   : > { %v2445_v18 = vpop.permute.xlu0 %2444  ;;  %v2440_v43 = vpop.permute.xlu1 %2439 }
 0x19c   : > { %2261 = vmatpush3.bf16.xpose.msk.msra.mxu1 %vm3098_vm2, %v2259_v11  ;;  %v2447_v46 = vunpack.i.h.bf16 %v2445_v18  ;;  %v2446_v51 = vunpack.i.l.bf16 %v2445_v18  ;;  %v2442_v53 = vunpack.i.h.bf16 %v2440_v43  ;;  %v2441_v56 = vunpack.i.l.bf16 %v2440_v43 }
 0x19d   : > { %2264 = vmatprep.subr.msk.bf16.mxu1 %vm3098_vm2, %v2262_v8 }
 0x19e   : > { %v2280_v58 = vpack.c.bf16 %v2447_v46, %v2446_v51  ;;  %v2277_v61 = vpack.c.bf16 %v2442_v53, %v2441_v56 }
 0x19f   : > { %v2455_v28 = vpop.permute.xlu0 %2454  ;;  %v2450_v63 = vpop.permute.xlu1 %2449 }
 0x1a0   : > { %v2457_v2 = vunpack.i.h.bf16 %v2455_v28  ;;  %v2456_v4 = vunpack.i.l.bf16 %v2455_v28  ;;  %v2452_v7 = vunpack.i.h.bf16 %v2450_v63  ;;  %v2451_v9 = vunpack.i.l.bf16 %v2450_v63 }
 0x1a2   : > { %v2286_v12 = vpack.c.bf16 %v2457_v2, %v2456_v4  ;;  %v2283_v14 = vpack.c.bf16 %v2452_v7, %v2451_v9 }
 0x1a3   : > { %v569_v36 = vpop.permute.xlu0 %568  ;;  %v2460_v17 = vpop.permute.xlu1 %2459 }
 0x1a4   : > { %2267 = vmatpush3.bf16.xpose.msk.msra.mxu1 %vm3098_vm2, %v2265_v34  ;;  %2116 = vmatprep.mubr.msk.f32.mxu1 %vm696_vm1, %v569_v36  ;;  %v2462_v19 = vunpack.i.h.bf16 %v2460_v17  ;;  %v2461_v23 = vunpack.i.l.bf16 %v2460_v17 }
 0x1a5   : > { %2270 = vmatprep.subr.msk.bf16.mxu1 %vm3098_vm2, %v2268_v31 }
 0x1a6   : > { %v2289_v25 = vpack.c.bf16 %v2462_v19, %v2461_v23 }
 0x1a7   : > { %v571_v30 = vpop.permute.xlu1 %570  ;;  %v573_v32 = vpop.permute.xlu0 %572 }
 0x1ab   : > { %v575_v48 = vpop.permute.xlu1 %574 }
 0x1ac   : > { %2273 = vmatpush3.bf16.xpose.msk.msra.mxu1 %vm3098_vm2, %v2271_v41 }
 0x1ad   : > { %2276 = vmatprep.subr.msk.bf16.mxu1 %vm3098_vm2, %v2274_v39 }
 0x1b4   : > { %2279 = vmatpush3.bf16.xpose.msk.msra.mxu1 %vm3098_vm2, %v2277_v61 }
 0x1b5   : > { %2282 = vmatprep.subr.msk.bf16.mxu1 %vm3098_vm2, %v2280_v58 }
 0x1bc   : > { %2285 = vmatpush3.bf16.xpose.msk.msra.mxu1 %vm3098_vm2, %v2283_v14 }
 0x1bd   : > { %2288 = vmatprep.subr.msk.bf16.mxu1 %vm3098_vm2, %v2286_v12 }
 0x1c4   : > { %2291 = vmatpush3.bf16.xpose.msk.msra.mxu1 %vm3098_vm2, %v2289_v25 }
 0x1c5   : > { %2340 = vmatprep.subr.bf16.mxu1 %v2695_v38 }
 0x1cb   : > { %2117 = vmatmul.mubr.msk.f32.vlgmr.msra.gmra.mrb[0].mxu1 %vm696_vm1, %v569_v36 }
 0x1cc   : > { %2118 = vmatprep.mubr.msk.f32.mxu1 %vm696_vm1, %v571_v30  ;;  %2356 = vmatpush1.bf16.msra.mxu1 %v2826_v44  ;;  %v577_v44 = vpop.permute.xlu0 %576 }
 0x1cd   : > { %2341 = vmatprep.subr.bf16.mxu1 %v2695_v38 }
 0x1cf   : > { %2119 = vmatmul.mubr.msk.f32.gmra.mrb[2].mxu1 %vm696_vm1, %v571_v30 }
 0x1d0   : > { %2120 = vmatprep.mubr.msk.f32.mxu1 %vm696_vm1, %v573_v32  ;;  %2357 = vmatpush1.bf16.msra.mxu1 %v2838_v49  ;;  %v579_v49 = vpop.permute.xlu1 %578 }
 0x1d1   : > { %2342 = vmatprep.subr.bf16.mxu1 %v2695_v38 }
 0x1d3   : > { %2121 = vmatmul.mubr.msk.f32.gmra.mrb[4].mxu1 %vm696_vm1, %v573_v32 }
 0x1d4   : > { %2122 = vmatprep.mubr.msk.f32.mxu1 %vm696_vm1, %v575_v48  ;;  %2358 = vmatpush1.bf16.msra.mxu1 %v2850_v54  ;;  %v581_v54 = vpop.permute.xlu0 %580 }
 0x1d5   : > { %2343 = vmatprep.subr.bf16.mxu1 %v2695_v38 }
 0x1d7   : > { %2123 = vmatmul.mubr.msk.f32.gmra.mrb[6].mxu1 %vm696_vm1, %v575_v48 }
 0x1d8   : > { %2124 = vmatprep.mubr.msk.f32.mxu1 %vm696_vm1, %v577_v44  ;;  %2359 = vmatpush1.bf16.msra.mxu1 %v2862_v59  ;;  %v583_v59 = vpop.permute.xlu1 %582 }
 0x1d9   : > { %2344 = vmatprep.subr.bf16.mxu1 %v2695_v38 }
 0x1db   : > { %2125 = vmatmul.mubr.msk.f32.gmra.mrb[8].mxu1 %vm696_vm1, %v577_v44 }
 0x1dc   : > { %2126 = vmatprep.mubr.msk.f32.mxu1 %vm696_vm1, %v579_v49  ;;  %2360 = vmatpush1.bf16.msra.mxu1 %v2874_v0  ;;  %v585_v0 = vpop.permute.xlu0 %584 }
 0x1dd   : > { %2345 = vmatprep.subr.bf16.mxu1 %v2695_v38 }
 0x1df   : > { %2127 = vmatmul.mubr.msk.f32.gmra.mrb[10].mxu1 %vm696_vm1, %v579_v49 }
 0x1e0   : > { %2128 = vmatprep.mubr.msk.f32.mxu1 %vm696_vm1, %v581_v54  ;;  %2361 = vmatpush1.bf16.msra.mxu1 %v2886_v5  ;;  %v587_v5 = vpop.permute.xlu1 %586 }
 0x1e1   : > { %2346 = vmatprep.subr.bf16.mxu1 %v2695_v38 }
 0x1e3   : > { %2129 = vmatmul.mubr.msk.f32.gmra.mrb[12].mxu1 %vm696_vm1, %v581_v54 }
 0x1e4   : > { %2130 = vmatprep.mubr.msk.f32.mxu1 %vm696_vm1, %v583_v59  ;;  %2362 = vmatpush1.bf16.msra.mxu1 %v2898_v10  ;;  %v589_v10 = vpop.permute.xlu0 %588 }
 0x1e5   : > { %2347 = vmatprep.subr.bf16.mxu1 %v2695_v38 }
 0x1e7   : > { %2131 = vmatmul.mubr.msk.f32.gmra.mrb[14].mxu1 %vm696_vm1, %v583_v59 }
 0x1e8   : > { %2132 = vmatprep.mubr.msk.f32.mxu1 %vm696_vm1, %v585_v0  ;;  %2363 = vmatpush1.bf16.msra.mxu1 %v2910_v15  ;;  %v591_v15 = vpop.permute.xlu1 %590 }
 0x1e9   : > { %2348 = vmatprep.subr.bf16.mxu1 %v2695_v38 }
 0x1eb   : > { %2133 = vmatmul.mubr.msk.f32.gmra.mrb[16].mxu1 %vm696_vm1, %v585_v0 }
 0x1ec   : > { %2134 = vmatprep.mubr.msk.f32.mxu1 %vm696_vm1, %v587_v5  ;;  %2364 = vmatpush1.bf16.msra.mxu1 %v2922_v20  ;;  %v593_v20 = vpop.permute.xlu0 %592 }
 0x1ed   : > { %2349 = vmatprep.subr.bf16.mxu1 %v2695_v38 }
 0x1ef   : > { %2135 = vmatmul.mubr.msk.f32.gmra.mrb[18].mxu1 %vm696_vm1, %v587_v5 }
 0x1f0   : > { %2136 = vmatprep.mubr.msk.f32.mxu1 %vm696_vm1, %v589_v10  ;;  %2365 = vmatpush1.bf16.msra.mxu1 %v2937_v26  ;;  %v595_v26 = vpop.permute.xlu1 %594 }
 0x1f1   : > { %2350 = vmatprep.subr.bf16.mxu1 %v2695_v38 }
 0x1f3   : > { %2137 = vmatmul.mubr.msk.f32.gmra.mrb[20].mxu1 %vm696_vm1, %v589_v10 }
 0x1f4   : > { %2138 = vmatprep.mubr.msk.f32.mxu1 %vm696_vm1, %v591_v15  ;;  %2366 = vmatpush1.bf16.msra.mxu1 %v2954_v33  ;;  %v597_v33 = vpop.permute.xlu0 %596 }
 0x1f5   : > { %2351 = vmatprep.subr.bf16.mxu1 %v2695_v38 }
 0x1f7   : > { %2139 = vmatmul.mubr.msk.f32.gmra.mrb[22].mxu1 %vm696_vm1, %v591_v15 }
 0x1f8   : > { %2140 = vmatprep.mubr.msk.f32.mxu1 %vm696_vm1, %v593_v20  ;;  %2367 = vmatpush1.bf16.msra.mxu1 %v2972_v45  ;;  %v599_v45 = vpop.permute.xlu1 %598 }
 0x1f9   : > { %2352 = vmatprep.subr.bf16.mxu1 %v2695_v38 }
 0x1fb   : > { %2141 = vmatmul.mubr.msk.f32.gmra.mrb[24].mxu1 %vm696_vm1, %v593_v20 }
 0x1fc   : > { %2142 = vmatprep.mubr.msk.f32.mxu1 %vm696_vm1, %v595_v26  ;;  %2368 = vmatpush1.bf16.msra.mxu1 %v2990_v62  ;;  %v601_v62 = vpop.permute.xlu0 %600  ;;  %v603_v37 = vpop.permute.xlu1 %602 }
 0x1fd   : > { %2353 = vmatprep.subr.bf16.mxu1 %v2695_v38 }
 0x1ff   : > { %2143 = vmatmul.mubr.msk.f32.gmra.mrb[26].mxu1 %vm696_vm1, %v595_v26 }
 0x200   : > { %2144 = vmatprep.mubr.msk.f32.mxu1 %vm696_vm1, %v597_v33  ;;  %2369 = vmatpush1.bf16.msra.mxu1 %v3005_v16  ;;  %v605_v16 = vpop.permute.xlu0 %604 }
 0x201   : > { %2354 = vmatprep.subr.bf16.mxu1 %v2695_v38 }
 0x203   : > { %2145 = vmatmul.mubr.msk.f32.gmra.mrb[28].mxu1 %vm696_vm1, %v597_v33 }
 0x204   : > { %2146 = vmatprep.mubr.msk.f32.mxu1 %vm696_vm1, %v599_v45  ;;  %2370 = vmatpush1.bf16.msra.mxu1 %v3016_v29  ;;  %v607_v29 = vpop.permute.xlu1 %606 }
 0x205   : > { %2355 = vmatprep.subr.bf16.mxu1 %v2695_v38  ;;  %v609_v38 = vpop.permute.xlu0 %608 }
 0x207   : > { %2147 = vmatmul.mubr.msk.f32.gmra.mrb[30].mxu1 %vm696_vm1, %v599_v45 }
 0x208   : > { %2148 = vmatprep.mubr.msk.f32.mxu1 %vm696_vm1, %v601_v62  ;;  %2371 = vmatpush1.bf16.msra.mxu1 %v3026_v50  ;;  %v611_v50 = vpop.permute.xlu1 %610 }
 0x209   : > { %v613_v42 = vpop.permute.xlu0 %612 }
 0x20b   : > { %2149 = vmatmul.mubr.msk.f32.gmra.mrb[32].mxu1 %vm696_vm1, %v601_v62 }
 0x20c   : > { %2150 = vmatprep.mubr.msk.f32.mxu1 %vm696_vm1, %v603_v37  ;;  %v615_v55 = vpop.permute.xlu1 %614 }
 0x20d   : > { %v617_v60 = vpop.permute.xlu0 %616 }
 0x20f   : > { %2151 = vmatmul.mubr.msk.f32.gmra.mrb[34].mxu1 %vm696_vm1, %v603_v37 }
 0x210   : > { %2152 = vmatprep.mubr.msk.f32.mxu1 %vm696_vm1, %v605_v16  ;;  %v619_v1 = vpop.permute.xlu1 %618 }
 0x211   : > { %v621_v3 = vpop.permute.xlu0 %620 }
 0x213   : > { %2153 = vmatmul.mubr.msk.f32.gmra.mrb[36].mxu1 %vm696_vm1, %v605_v16 }
 0x214   : > { %2154 = vmatprep.mubr.msk.f32.mxu1 %vm696_vm1, %v607_v29  ;;  %v623_v6 = vpop.permute.xlu1 %622 }
 0x215   : > { %v625_v8 = vpop.permute.xlu0 %624 }
 0x217   : > { %2155 = vmatmul.mubr.msk.f32.gmra.mrb[38].mxu1 %vm696_vm1, %v607_v29 }
 0x218   : > { %2156 = vmatprep.mubr.msk.f32.mxu1 %vm696_vm1, %v609_v38  ;;  %v627_v11 = vpop.permute.xlu1 %626 }
 0x219   : > { %v629_v13 = vpop.permute.xlu0 %628 }
 0x21b   : > { %2157 = vmatmul.mubr.msk.f32.gmra.mrb[40].mxu1 %vm696_vm1, %v609_v38 }
 0x21c   : > { %2158 = vmatprep.mubr.msk.f32.mxu1 %vm696_vm1, %v611_v50  ;;  %v631_v18 = vpop.permute.xlu1 %630 }
 0x21f   : > { %2159 = vmatmul.mubr.msk.f32.gmra.mrb[42].mxu1 %vm696_vm1, %v611_v50 }
 0x220   : > { %2160 = vmatprep.mubr.msk.f32.mxu1 %vm696_vm1, %v613_v42 }
 0x223   : > { %2161 = vmatmul.mubr.msk.f32.gmra.mrb[44].mxu1 %vm696_vm1, %v613_v42 }
 0x224   : > { %2162 = vmatprep.mubr.msk.f32.mxu1 %vm696_vm1, %v615_v55 }
 0x227   : > { %2163 = vmatmul.mubr.msk.f32.gmra.mrb[46].mxu1 %vm696_vm1, %v615_v55 }
 0x228   : > { %2164 = vmatprep.mubr.msk.f32.mxu1 %vm696_vm1, %v617_v60 }
 0x22b   : > { %2165 = vmatmul.mubr.msk.f32.gmra.mrb[48].mxu1 %vm696_vm1, %v617_v60 }
 0x22c   : > { %2166 = vmatprep.mubr.msk.f32.mxu1 %vm696_vm1, %v619_v1 }
 0x22f   : > { %2167 = vmatmul.mubr.msk.f32.gmra.mrb[50].mxu1 %vm696_vm1, %v619_v1 }
 0x230   : > { %2168 = vmatprep.mubr.msk.f32.mxu1 %vm696_vm1, %v621_v3 }
 0x233   : > { %2169 = vmatmul.mubr.msk.f32.gmra.mrb[52].mxu1 %vm696_vm1, %v621_v3 }
 0x234   : > { %2170 = vmatprep.mubr.msk.f32.mxu1 %vm696_vm1, %v623_v6 }
 0x237   : > { %2171 = vmatmul.mubr.msk.f32.gmra.mrb[54].mxu1 %vm696_vm1, %v623_v6 }
 0x238   : > { %2172 = vmatprep.mubr.msk.f32.mxu1 %vm696_vm1, %v625_v8 }
 0x23b   : > { %2173 = vmatmul.mubr.msk.f32.gmra.mrb[56].mxu1 %vm696_vm1, %v625_v8 }
 0x23c   : > { %2174 = vmatprep.mubr.msk.f32.mxu1 %vm696_vm1, %v627_v11 }
 0x23f   : > { %2175 = vmatmul.mubr.msk.f32.gmra.mrb[58].mxu1 %vm696_vm1, %v627_v11 }
 0x240   : > { %2176 = vmatprep.mubr.msk.f32.mxu1 %vm696_vm1, %v629_v13 }
 0x243   : > { %2177 = vmatmul.mubr.msk.f32.gmra.mrb[60].mxu1 %vm696_vm1, %v629_v13 }
 0x244   : > { %2178 = vmatprep.mubr.msk.f32.mxu1 %vm696_vm1, %v631_v18 }
 0x247   : > { %2179 = vmatmul.mubr.msk.f32.gmra.mrb[62].mxu1 %vm696_vm1, %v631_v18 }
 0x29e   : > { %v3230_v21 = vpop.f32.mrb[0].mxu1 }
 0x29f   : > { %v3232_v22 = vpop.f32.mrb[1].mxu1 }
 0x2a0   : > { %v1082_v24 = vmax.f32 %v3230_v21, %v3232_v22 }
 0x2a2   : > { %1083 = vmax.xlane.f32.xlu0 %v1082_v24  ;;  %v3236_v27 = vpop.f32.mrb[2].mxu1 }
 0x2a3   : > { %v3238_v28 = vpop.f32.mrb[3].mxu1 }
 0x2a4   : > { %v1085_v31 = vmax.f32 %v3236_v27, %v3238_v28 }
 0x2a6   : > { %1086 = vmax.xlane.f32.xlu1 %v1085_v31  ;;  %v3242_v34 = vpop.f32.mrb[4].mxu1 }
 0x2a7   : > { %v3244_v35 = vpop.f32.mrb[5].mxu1 }
 0x2a8   : > { %v1088_v36 = vmax.f32 %v3242_v34, %v3244_v35 }
 0x2aa   : > { %1089 = vmax.xlane.f32.xlu0 %v1088_v36  ;;  %v3248_v40 = vpop.f32.mrb[6].mxu1 }
 0x2ab   : > { %v3250_v47 = vpop.f32.mrb[7].mxu1 }
 0x2ac   : > { %v1091_v52 = vmax.f32 %v3248_v40, %v3250_v47 }
 0x2ae   : > { %1092 = vmax.xlane.f32.xlu0 %v1091_v52  ;;  %v3254_v57 = vpop.f32.mrb[8].mxu1 }
 0x2af   : > { %v3256_v39 = vpop.f32.mrb[9].mxu1 }
 0x2b0   : > { %v1094_v41 = vmax.f32 %v3254_v57, %v3256_v39 }
 0x2b2   : > { %1095 = vmax.xlane.f32.xlu1 %v1094_v41  ;;  %v3260_v43 = vpop.f32.mrb[10].mxu1 }
 0x2b3   : > { %v3262_v46 = vpop.f32.mrb[11].mxu1 }
 0x2b4   : > { %v1097_v51 = vmax.f32 %v3260_v43, %v3262_v46 }
 0x2b6   : > { %1098 = vmax.xlane.f32.xlu0 %v1097_v51  ;;  %v3266_v53 = vpop.f32.mrb[12].mxu1 }
 0x2b7   : > { %v3268_v56 = vpop.f32.mrb[13].mxu1 }
 0x2b8   : > { %v1100_v58 = vmax.f32 %v3266_v53, %v3268_v56 }
 0x2ba   : > { %1101 = vmax.xlane.f32.xlu1 %v1100_v58  ;;  %v3272_v61 = vpop.f32.mrb[14].mxu1 }
 0x2bb   : > { %v3274_v63 = vpop.f32.mrb[15].mxu1 }
 0x2bc   : > { %v1103_v2 = vmax.f32 %v3272_v61, %v3274_v63 }
 0x2be   : > { %1104 = vmax.xlane.f32.xlu0 %v1103_v2  ;;  %v3278_v4 = vpop.f32.mrb[16].mxu1 }
 0x2bf   : > { %v3280_v7 = vpop.f32.mrb[17].mxu1 }
 0x2c0   : > { %v1106_v9 = vmax.f32 %v3278_v4, %v3280_v7 }
 0x2c2   : > { %1107 = vmax.xlane.f32.xlu1 %v1106_v9  ;;  %v3284_v12 = vpop.f32.mrb[18].mxu1 }
 0x2c3   : > { %v3286_v14 = vpop.f32.mrb[19].mxu1 }
 0x2c4   : > { %v1109_v17 = vmax.f32 %v3284_v12, %v3286_v14 }
 0x2c6   : > { %1110 = vmax.xlane.f32.xlu0 %v1109_v17  ;;  %v3290_v19 = vpop.f32.mrb[20].mxu1 }
 0x2c7   : > { %v3292_v23 = vpop.f32.mrb[21].mxu1 }
 0x2c8   : > { %v1112_v25 = vmax.f32 %v3290_v19, %v3292_v23 }
 0x2ca   : > { %1113 = vmax.xlane.f32.xlu1 %v1112_v25  ;;  %v3296_v30 = vpop.f32.mrb[22].mxu1 }
 0x2cb   : > { %v3298_v32 = vpop.f32.mrb[23].mxu1 }
 0x2cc   : > { %v1115_v48 = vmax.f32 %v3296_v30, %v3298_v32 }
 0x2ce   : > { %1116 = vmax.xlane.f32.xlu0 %v1115_v48  ;;  %v3302_v44 = vpop.f32.mrb[24].mxu1 }
 0x2cf   : > { %v3304_v49 = vpop.f32.mrb[25].mxu1 }
 0x2d0   : > { %v1118_v54 = vmax.f32 %v3302_v44, %v3304_v49 }
 0x2d2   : > { %1119 = vmax.xlane.f32.xlu1 %v1118_v54  ;;  %v3308_v59 = vpop.f32.mrb[26].mxu1 }
 0x2d3   : > { %v3310_v0 = vpop.f32.mrb[27].mxu1 }
 0x2d4   : > { %v1121_v5 = vmax.f32 %v3308_v59, %v3310_v0 }
 0x2d6   : > { %1122 = vmax.xlane.f32.xlu0 %v1121_v5  ;;  %v3314_v10 = vpop.f32.mrb[28].mxu1 }
 0x2d7   : > { %v3316_v15 = vpop.f32.mrb[29].mxu1 }
 0x2d8   : > { %v1124_v20 = vmax.f32 %v3314_v10, %v3316_v15 }
 0x2da   : > { %1125 = vmax.xlane.f32.xlu1 %v1124_v20  ;;  %v3320_v26 = vpop.f32.mrb[30].mxu1 }
 0x2db   : > { %v3322_v33 = vpop.f32.mrb[31].mxu1 }
 0x2dc   : > { %v1127_v45 = vmax.f32 %v3320_v26, %v3322_v33 }
 0x2de   : > { %1128 = vmax.xlane.f32.xlu0 %v1127_v45  ;;  %v3326_v62 = vpop.f32.mrb[32].mxu1 }
 0x2df   : > { %v3328_v37 = vpop.f32.mrb[33].mxu1 }
 0x2e0   : > { %v1130_v16 = vmax.f32 %v3326_v62, %v3328_v37 }
 0x2e2   : > { %1131 = vmax.xlane.f32.xlu1 %v1130_v16  ;;  %v3332_v29 = vpop.f32.mrb[34].mxu1 }
 0x2e3   : > { %v3334_v38 = vpop.f32.mrb[35].mxu1 }
 0x2e4   : > { %v1133_v50 = vmax.f32 %v3332_v29, %v3334_v38 }
 0x2e6   : > { %1134 = vmax.xlane.f32.xlu0 %v1133_v50  ;;  %v3338_v42 = vpop.f32.mrb[36].mxu1 }
 0x2e7   : > { %v3340_v55 = vpop.f32.mrb[37].mxu1 }
 0x2e8   : > { %v1136_v60 = vmax.f32 %v3338_v42, %v3340_v55 }
 0x2ea   : > { %1137 = vmax.xlane.f32.xlu1 %v1136_v60  ;;  %v3344_v1 = vpop.f32.mrb[38].mxu1 }
 0x2eb   : > { %v3346_v3 = vpop.f32.mrb[39].mxu1 }
 0x2ec   : > { %v1139_v6 = vmax.f32 %v3344_v1, %v3346_v3 }
 0x2ee   : > { %1140 = vmax.xlane.f32.xlu0 %v1139_v6  ;;  %v3350_v8 = vpop.f32.mrb[40].mxu1 }
 0x2ef   : > { %v3352_v11 = vpop.f32.mrb[41].mxu1 }
 0x2f0   : > { %v1142_v13 = vmax.f32 %v3350_v8, %v3352_v11 }
 0x2f2   : > { %1143 = vmax.xlane.f32.xlu1 %v1142_v13  ;;  %v3356_v18 = vpop.f32.mrb[42].mxu1 }
 0x2f3   : > { %v3358_v24 = vpop.f32.mrb[43].mxu1 }
 0x2f4   : > { %v1145_v31 = vmax.f32 %v3356_v18, %v3358_v24 }
 0x2f6   : > { %1146 = vmax.xlane.f32.xlu0 %v1145_v31  ;;  %v3362_v36 = vpop.f32.mrb[44].mxu1 }
 0x2f7   : > { %v3364_v52 = vpop.f32.mrb[45].mxu1 }
 0x2f8   : > { %v1148_v41 = vmax.f32 %v3362_v36, %v3364_v52 }
 0x2fa   : > { %1149 = vmax.xlane.f32.xlu1 %v1148_v41  ;;  %v3368_v51 = vpop.f32.mrb[46].mxu1 }
 0x2fb   : > { %v3370_v58 = vpop.f32.mrb[47].mxu1 }
 0x2fc   : > { %v1151_v2 = vmax.f32 %v3368_v51, %v3370_v58 }
 0x2fe   : > { %1152 = vmax.xlane.f32.xlu1 %v1151_v2  ;;  %v3374_v9 = vpop.f32.mrb[48].mxu1 }
 0x2ff   : > { %v3376_v17 = vpop.f32.mrb[49].mxu1 }
 0x300   : > { %3881 = vst [vmem:[#allocation2_spill] sm:$0xff] %v3376_v17  ;;  %v1154_v25 = vmax.f32 %v3374_v9, %v3376_v17 }
 0x302   : > { %1155 = vmax.xlane.f32.xlu1 %v1154_v25  ;;  %v3380_v48 = vpop.f32.mrb[50].mxu1 }
 0x303   : > { %3882 = vst [vmem:[#allocation3_spill] sm:$0xff] %v3380_v48  ;;  %v3382_v54 = vpop.f32.mrb[51].mxu1 }
 0x304   : > { %3883 = vst [vmem:[#allocation4_spill] sm:$0xff] %v3382_v54  ;;  %v1157_v5 = vmax.f32 %v3380_v48, %v3382_v54 }
 0x306   : > { %1158 = vmax.xlane.f32.xlu1 %v1157_v5  ;;  %v3386_v20 = vpop.f32.mrb[52].mxu1 }
 0x307   : > { %3884 = vst [vmem:[#allocation5_spill] sm:$0xff] %v3386_v20  ;;  %v3388_v45 = vpop.f32.mrb[53].mxu1 }
 0x308   : > { %3885 = vst [vmem:[#allocation6_spill] sm:$0xff] %v3388_v45  ;;  %v1160_v16 = vmax.f32 %v3386_v20, %v3388_v45 }
 0x30a   : > { %1161 = vmax.xlane.f32.xlu1 %v1160_v16  ;;  %v3392_v50 = vpop.f32.mrb[54].mxu1 }
 0x30b   : > { %3886 = vst [vmem:[#allocation7_spill] sm:$0xff] %v3392_v50  ;;  %v3394_v60 = vpop.f32.mrb[55].mxu1 }
 0x30c   : > { %3887 = vst [vmem:[#allocation8_spill] sm:$0xff] %v3394_v60  ;;  %v1163_v6 = vmax.f32 %v3392_v50, %v3394_v60 }
 0x30e   : > { %1164 = vmax.xlane.f32.xlu1 %v1163_v6  ;;  %v3398_v13 = vpop.f32.mrb[56].mxu1 }
 0x30f   : > { %3888 = vst [vmem:[#allocation9_spill] sm:$0xff] %v3398_v13  ;;  %v3400_v31 = vpop.f32.mrb[57].mxu1 }
 0x310   : > { %3889 = vst [vmem:[#allocation10_spill] sm:$0xff] %v3400_v31  ;;  %v1166_v41 = vmax.f32 %v3398_v13, %v3400_v31 }
 0x312   : > { %1167 = vmax.xlane.f32.xlu1 %v1166_v41  ;;  %v3404_v2 = vpop.f32.mrb[58].mxu1 }
 0x313   : > { %3890 = vst [vmem:[#allocation11_spill] sm:$0xff] %v3404_v2  ;;  %v3406_v25 = vpop.f32.mrb[59].mxu1 }
 0x314   : > { %3891 = vst [vmem:[#allocation12_spill] sm:$0xff] %v3406_v25  ;;  %v1169_v5 = vmax.f32 %v3404_v2, %v3406_v25 }
 0x316   : > { %1170 = vmax.xlane.f32.xlu1 %v1169_v5  ;;  %v3410_v16 = vpop.f32.mrb[60].mxu1 }
 0x317   : > { %3892 = vst [vmem:[#allocation13_spill] sm:$0xff] %v3410_v16  ;;  %v3412_v60 = vpop.f32.mrb[61].mxu1 }
 0x318   : > { %3893 = vst [vmem:[#allocation14_spill] sm:$0xff] %v3412_v60  ;;  %v1172_v6 = vmax.f32 %v3410_v16, %v3412_v60 }
 0x31a   : > { %1173 = vmax.xlane.f32.xlu1 %v1172_v6  ;;  %v3416_v50 = vpop.f32.mrb[62].mxu1 }
 0x31b   : > { %v3418_v31 = vpop.f32.mrb[63].mxu1 }
 0x32f   : > { %v1084_v13 = vpop.xlane.xlu0 %1083 }
 0x330   : > { %v1178_v45 = vsub.f32 %v3230_v21, %v1084_v13  ;;  %v1179_v5 = vsub.f32 %v3232_v22, %v1084_v13 }
 0x332   : > { %v1242_v25 = vmul.f32 1.442695, %v1178_v45  ;;  %v1244_v2 = vmul.f32 1.442695, %v1179_v5 }
 0x333   : > { %v1087_v20 = vpop.xlane.xlu1 %1086 }
 0x334   : > { %2463 = vpow2.f32 %v1242_v25  ;;  %v1180_v54 = vsub.f32 %v3236_v27, %v1087_v20  ;;  %v1181_v6 = vsub.f32 %v3238_v28, %v1087_v20 }
 0x335   : > { %2465 = vpow2.f32 %v1244_v2 }
 0x336   : > { %v1246_v60 = vmul.f32 1.442695, %v1180_v54  ;;  %v1248_v16 = vmul.f32 1.442695, %v1181_v6 }
 0x337   : > { %v1090_v48 = vpop.xlane.xlu0 %1089 }
 0x338   : > { %2467 = vpow2.f32 %v1246_v60  ;;  %v1182_v41 = vsub.f32 %v3242_v34, %v1090_v48  ;;  %v1183_v17 = vsub.f32 %v3244_v35, %v1090_v48 }
 0x339   : > { %2469 = vpow2.f32 %v1248_v16 }
 0x33a   : > { %v1250_v21 = vmul.f32 1.442695, %v1182_v41  ;;  %v1252_v22 = vmul.f32 1.442695, %v1183_v17 }
 0x33b   : > { %v1093_v45 = vpop.xlane.xlu0 %1092 }
 0x33c   : > { %2471 = vpow2.f32 %v1250_v21  ;;  %v1184_v13 = vsub.f32 %v3248_v40, %v1093_v45  ;;  %v1185_v27 = vsub.f32 %v3250_v47, %v1093_v45 }
 0x33d   : > { %2473 = vpow2.f32 %v1252_v22 }
 0x33e   : > { %v3430_v28 = vpop.eup %2463  ;;  %v1254_v54 = vmul.f32 1.442695, %v1184_v13  ;;  %v1256_v20 = vmul.f32 1.442695, %v1185_v27 }
 0x33f   : > { %v3432_v2 = vpop.eup %2465  ;;  %v1096_v60 = vpop.xlane.xlu1 %1095 }
 0x340   : > { %2475 = vpow2.f32 %v1254_v54  ;;  %v1186_v34 = vsub.f32 %v3254_v57, %v1096_v60  ;;  %v1187_v35 = vsub.f32 %v3256_v39, %v1096_v60  ;;  %v1370_v17 = vadd.f32 %v3432_v2, %v3430_v28 }
 0x341   : > { %2477 = vpow2.f32 %v1256_v20 }
 0x342   : > { %v3438_v40 = vpop.eup %2467  ;;  %v1258_v47 = vmul.f32 1.442695, %v1186_v34  ;;  %v1260_v48 = vmul.f32 1.442695, %v1187_v35  ;;  %1371 = vadd.xlane.f32.xlu0 %v1370_v17 }
 0x343   : > { %v3440_v25 = vpop.eup %2469  ;;  %v1099_v16 = vpop.xlane.xlu0 %1098 }
 0x344   : > { %2479 = vpow2.f32 %v1258_v47  ;;  %v1188_v41 = vsub.f32 %v3260_v43, %v1099_v16  ;;  %v1189_v5 = vsub.f32 %v3262_v46, %v1099_v16  ;;  %v1373_v57 = vadd.f32 %v3440_v25, %v3438_v40 }
 0x345   : > { %2481 = vpow2.f32 %v1260_v48 }
 0x346   : > { %v3446_v39 = vpop.eup %2471  ;;  %v1262_v6 = vmul.f32 1.442695, %v1188_v41  ;;  %v1264_v21 = vmul.f32 1.442695, %v1189_v5  ;;  %1374 = vadd.xlane.f32.xlu0 %v1373_v57 }
 0x347   : > { %v3448_v22 = vpop.eup %2473  ;;  %v1102_v45 = vpop.xlane.xlu1 %1101 }
 0x348   : > { %2483 = vpow2.f32 %v1262_v6  ;;  %v1190_v13 = vsub.f32 %v3266_v53, %v1102_v45  ;;  %v1191_v27 = vsub.f32 %v3268_v56, %v1102_v45  ;;  %v1376_v43 = vadd.f32 %v3448_v22, %v3446_v39 }
 0x349   : > { %2485 = vpow2.f32 %v1264_v21 }
 0x34a   : > { %v3454_v46 = vpop.eup %2475  ;;  %v1266_v54 = vmul.f32 1.442695, %v1190_v13  ;;  %v1268_v20 = vmul.f32 1.442695, %v1191_v27  ;;  %1377 = vadd.xlane.f32.xlu0 %v1376_v43 }
 0x34b   : > { %v3456_v60 = vpop.eup %2477  ;;  %v1105_v34 = vpop.xlane.xlu0 %1104 }
 0x34c   : > { %2487 = vpow2.f32 %v1266_v54  ;;  %v1192_v35 = vsub.f32 %v3272_v61, %v1105_v34  ;;  %v1193_v17 = vsub.f32 %v3274_v63, %v1105_v34  ;;  %v1379_v53 = vadd.f32 %v3456_v60, %v3454_v46 }
 0x34d   : > { %2489 = vpow2.f32 %v1268_v20 }
 0x34e   : > { %v3462_v56 = vpop.eup %2479  ;;  %v1270_v47 = vmul.f32 1.442695, %v1192_v35  ;;  %v1272_v48 = vmul.f32 1.442695, %v1193_v17  ;;  %1380 = vadd.xlane.f32.xlu0 %v1379_v53 }
 0x34f   : > { %v3464_v16 = vpop.eup %2481  ;;  %v1108_v41 = vpop.xlane.xlu1 %1107 }
 0x350   : > { %2491 = vpow2.f32 %v1270_v47  ;;  %v1194_v5 = vsub.f32 %v3278_v4, %v1108_v41  ;;  %v1195_v57 = vsub.f32 %v3280_v7, %v1108_v41  ;;  %v1382_v61 = vadd.f32 %v3464_v16, %v3462_v56 }
 0x351   : > { %2493 = vpow2.f32 %v1272_v48 }
 0x352   : > { %v3470_v63 = vpop.eup %2483  ;;  %v1274_v6 = vmul.f32 1.442695, %v1194_v5  ;;  %v1276_v21 = vmul.f32 1.442695, %v1195_v57  ;;  %1383 = vadd.xlane.f32.xlu0 %v1382_v61 }
 0x353   : > { %v3472_v45 = vpop.eup %2485  ;;  %v1111_v13 = vpop.xlane.xlu0 %1110 }
 0x354   : > { %2495 = vpow2.f32 %v1274_v6  ;;  %v1196_v27 = vsub.f32 %v3284_v12, %v1111_v13  ;;  %v1197_v43 = vsub.f32 %v3286_v14, %v1111_v13  ;;  %v1385_v4 = vadd.f32 %v3472_v45, %v3470_v63 }
 0x355   : > { %2497 = vpow2.f32 %v1276_v21 }
 0x356   : > { %v3478_v7 = vpop.eup %2487  ;;  %v1278_v54 = vmul.f32 1.442695, %v1196_v27  ;;  %v1280_v20 = vmul.f32 1.442695, %v1197_v43  ;;  %1386 = vadd.xlane.f32.xlu0 %v1385_v4 }
 0x357   : > { %v3480_v34 = vpop.eup %2489  ;;  %v1114_v35 = vpop.xlane.xlu1 %1113 }
 0x358   : > { %2499 = vpow2.f32 %v1278_v54  ;;  %v1198_v17 = vsub.f32 %v3290_v19, %v1114_v35  ;;  %v1199_v53 = vsub.f32 %v3292_v23, %v1114_v35  ;;  %v1388_v12 = vadd.f32 %v3480_v34, %v3478_v7 }
 0x359   : > { %2501 = vpow2.f32 %v1280_v20  ;;  %v3894_v35 = vmax.f32 %v3416_v50, %v3418_v31 }
 0x35a   : > { %v3486_v14 = vpop.eup %2491  ;;  %v1282_v47 = vmul.f32 1.442695, %v1198_v17  ;;  %v1284_v48 = vmul.f32 1.442695, %v1199_v53  ;;  %1389 = vadd.xlane.f32.xlu0 %v1388_v12 }
 0x35b   : > { %v3488_v41 = vpop.eup %2493  ;;  %v1117_v5 = vpop.xlane.xlu0 %1116 }
 0x35c   : > { %2503 = vpow2.f32 %v1282_v47  ;;  %v1200_v57 = vsub.f32 %v3296_v30, %v1117_v5  ;;  %v1201_v61 = vsub.f32 %v3298_v32, %v1117_v5  ;;  %v1391_v19 = vadd.f32 %v3488_v41, %v3486_v14 }
 0x35d   : > { %2505 = vpow2.f32 %v1284_v48 }
 0x35e   : > { %v3494_v23 = vpop.eup %2495  ;;  %v1286_v6 = vmul.f32 1.442695, %v1200_v57  ;;  %v1288_v21 = vmul.f32 1.442695, %v1201_v61  ;;  %1392 = vadd.xlane.f32.xlu0 %v1391_v19 }
 0x35f   : > { %v3496_v13 = vpop.eup %2497  ;;  %v1120_v27 = vpop.xlane.xlu1 %1119 }
 0x360   : > { %2507 = vpow2.f32 %v1286_v6  ;;  %v1202_v43 = vsub.f32 %v3302_v44, %v1120_v27  ;;  %v1203_v4 = vsub.f32 %v3304_v49, %v1120_v27  ;;  %v1394_v30 = vadd.f32 %v3496_v13, %v3494_v23 }
 0x361   : > { %2509 = vpow2.f32 %v1288_v21 }
 0x362   : > { %v3502_v32 = vpop.eup %2499  ;;  %v1290_v54 = vmul.f32 1.442695, %v1202_v43  ;;  %v1292_v20 = vmul.f32 1.442695, %v1203_v4  ;;  %1395 = vadd.xlane.f32.xlu1 %v1394_v30  ;;  %1176 = vmax.xlane.f32.xlu0 %v3894_v35 }
 0x363   : > { %v3507_v17 = vpop.eup %2501  ;;  %v1123_v53 = vpop.xlane.xlu0 %1122 }
 0x364   : > { %2511 = vpow2.f32 %v1290_v54  ;;  %v1204_v44 = vsub.f32 %v3308_v59, %v1123_v53  ;;  %v1205_v49 = vsub.f32 %v3310_v0, %v1123_v53  ;;  %v1397_v12 = vadd.f32 %v3507_v17, %v3502_v32 }
 0x365   : > { %2513 = vpow2.f32 %v1292_v20 }
 0x366   : > { %v3513_v47 = vpop.eup %2503  ;;  %v1294_v48 = vmul.f32 1.442695, %v1204_v44  ;;  %v1296_v5 = vmul.f32 1.442695, %v1205_v49  ;;  %1398 = vadd.xlane.f32.xlu0 %v1397_v12 }
 0x367   : > { %v3515_v57 = vpop.eup %2505  ;;  %v1126_v61 = vpop.xlane.xlu1 %1125 }
 0x368   : > { %2515 = vpow2.f32 %v1294_v48  ;;  %v1206_v19 = vsub.f32 %v3314_v10, %v1126_v61  ;;  %v1207_v6 = vsub.f32 %v3316_v15, %v1126_v61  ;;  %v1400_v59 = vadd.f32 %v3515_v57, %v3513_v47 }
 0x369   : > { %2517 = vpow2.f32 %v1296_v5 }
 0x36a   : > { %v3521_v0 = vpop.eup %2507  ;;  %v1298_v21 = vmul.f32 1.442695, %v1206_v19  ;;  %v1300_v27 = vmul.f32 1.442695, %v1207_v6  ;;  %1401 = vadd.xlane.f32.xlu1 %v1400_v59 }
 0x36b   : > { %v3523_v43 = vpop.eup %2509  ;;  %v1129_v4 = vpop.xlane.xlu0 %1128 }
 0x36c   : > { %2519 = vpow2.f32 %v1298_v21  ;;  %v1208_v30 = vsub.f32 %v3320_v26, %v1129_v4  ;;  %v1209_v54 = vsub.f32 %v3322_v33, %v1129_v4  ;;  %v1403_v10 = vadd.f32 %v3523_v43, %v3521_v0 }
 0x36d   : > { %2521 = vpow2.f32 %v1300_v27 }
 0x36e   : > { %v3529_v15 = vpop.eup %2511  ;;  %v1302_v20 = vmul.f32 1.442695, %v1208_v30  ;;  %v1304_v35 = vmul.f32 1.442695, %v1209_v54  ;;  %1404 = vadd.xlane.f32.xlu0 %v1403_v10 }
 0x36f   : > { %v3531_v53 = vpop.eup %2513  ;;  %v1132_v44 = vpop.xlane.xlu1 %1131 }
 0x370   : > { %2523 = vpow2.f32 %v1302_v20  ;;  %v1210_v49 = vsub.f32 %v3326_v62, %v1132_v44  ;;  %v1211_v12 = vsub.f32 %v3328_v37, %v1132_v44  ;;  %v1406_v26 = vadd.f32 %v3531_v53, %v3529_v15 }
 0x371   : > { %2525 = vpow2.f32 %v1304_v35 }
 0x372   : > { %v3537_v33 = vpop.eup %2515  ;;  %v1306_v48 = vmul.f32 1.442695, %v1210_v49  ;;  %v1308_v5 = vmul.f32 1.442695, %v1211_v12  ;;  %1407 = vadd.xlane.f32.xlu1 %v1406_v26 }
 0x373   : > { %v3539_v61 = vpop.eup %2517  ;;  %v1135_v19 = vpop.xlane.xlu0 %1134 }
 0x374   : > { %2527 = vpow2.f32 %v1306_v48  ;;  %v1212_v6 = vsub.f32 %v3332_v29, %v1135_v19  ;;  %v1213_v59 = vsub.f32 %v3334_v38, %v1135_v19  ;;  %v1409_v62 = vadd.f32 %v3539_v61, %v3537_v33 }
 0x375   : > { %2529 = vpow2.f32 %v1308_v5 }
 0x376   : > { %v3545_v37 = vpop.eup %2519  ;;  %v1310_v21 = vmul.f32 1.442695, %v1212_v6  ;;  %v1312_v27 = vmul.f32 1.442695, %v1213_v59  ;;  %1410 = vadd.xlane.f32.xlu0 %v1409_v62 }
 0x377   : > { %v3547_v4 = vpop.eup %2521  ;;  %v1138_v30 = vpop.xlane.xlu1 %1137 }
 0x378   : > { %2531 = vpow2.f32 %v1310_v21  ;;  %v1214_v54 = vsub.f32 %v3338_v42, %v1138_v30  ;;  %v1215_v10 = vsub.f32 %v3340_v55, %v1138_v30  ;;  %v1412_v29 = vadd.f32 %v3547_v4, %v3545_v37 }
 0x379   : > { %2533 = vpow2.f32 %v1312_v27 }
 0x37a   : > { %v3553_v38 = vpop.eup %2523  ;;  %v1314_v20 = vmul.f32 1.442695, %v1214_v54  ;;  %v1316_v35 = vmul.f32 1.442695, %v1215_v10  ;;  %1413 = vadd.xlane.f32.xlu1 %v1412_v29 }
 0x37b   : > { %v3555_v44 = vpop.eup %2525  ;;  %v1141_v49 = vpop.xlane.xlu0 %1140 }
 0x37c   : > { %2535 = vpow2.f32 %v1314_v20  ;;  %v1216_v12 = vsub.f32 %v3344_v1, %v1141_v49  ;;  %v1217_v26 = vsub.f32 %v3346_v3, %v1141_v49  ;;  %v1415_v42 = vadd.f32 %v3555_v44, %v3553_v38 }
 0x37d   : > { %2537 = vpow2.f32 %v1316_v35 }
 0x37e   : > { %v3561_v55 = vpop.eup %2527  ;;  %v1318_v48 = vmul.f32 1.442695, %v1216_v12  ;;  %v1320_v5 = vmul.f32 1.442695, %v1217_v26  ;;  %1416 = vadd.xlane.f32.xlu0 %v1415_v42 }
 0x37f   : > { %v3563_v19 = vpop.eup %2529  ;;  %v1144_v6 = vpop.xlane.xlu1 %1143 }
 0x380   : > { %2539 = vpow2.f32 %v1318_v48  ;;  %v1218_v59 = vsub.f32 %v3350_v8, %v1144_v6  ;;  %v1219_v62 = vsub.f32 %v3352_v11, %v1144_v6  ;;  %v1418_v1 = vadd.f32 %v3563_v19, %v3561_v55 }
 0x381   : > { %2541 = vpow2.f32 %v1320_v5 }
 0x382   : > { %v3569_v3 = vpop.eup %2531  ;;  %v1322_v21 = vmul.f32 1.442695, %v1218_v59  ;;  %v1324_v27 = vmul.f32 1.442695, %v1219_v62  ;;  %1419 = vadd.xlane.f32.xlu1 %v1418_v1 }
 0x383   : > { %v3571_v30 = vpop.eup %2533  ;;  %v1147_v54 = vpop.xlane.xlu0 %1146 }
 0x384   : > { %2543 = vpow2.f32 %v1322_v21  ;;  %v1220_v10 = vsub.f32 %v3356_v18, %v1147_v54  ;;  %v1221_v29 = vsub.f32 %v3358_v24, %v1147_v54  ;;  %v1421_v8 = vadd.f32 %v3571_v30, %v3569_v3 }
 0x385   : > { %2545 = vpow2.f32 %v1324_v27 }
 0x386   : > { %v3577_v11 = vpop.eup %2535  ;;  %v1326_v20 = vmul.f32 1.442695, %v1220_v10  ;;  %v1328_v35 = vmul.f32 1.442695, %v1221_v29  ;;  %1422 = vadd.xlane.f32.xlu0 %v1421_v8  ;;  %v3895_v8 = vld [vmem:[#allocation2_spill] sm:$0xff] }
 0x387   : > { %v3579_v49 = vpop.eup %2537  ;;  %v1150_v12 = vpop.xlane.xlu1 %1149 }
 0x388   : > { %2547 = vpow2.f32 %v1326_v20  ;;  %v1222_v26 = vsub.f32 %v3362_v36, %v1150_v12  ;;  %v1223_v42 = vsub.f32 %v3364_v52, %v1150_v12  ;;  %v1424_v18 = vadd.f32 %v3579_v49, %v3577_v11 }
 0x389   : > { %2549 = vpow2.f32 %v1328_v35 }
 0x38a   : > { %v3585_v24 = vpop.eup %2539  ;;  %v1330_v48 = vmul.f32 1.442695, %v1222_v26  ;;  %v1332_v5 = vmul.f32 1.442695, %v1223_v42  ;;  %1425 = vadd.xlane.f32.xlu1 %v1424_v18  ;;  %v3896_v18 = vld [vmem:[#allocation3_spill] sm:$0xff] }
 0x38b   : > { %v3587_v6 = vpop.eup %2541  ;;  %v1153_v59 = vpop.xlane.xlu1 %1152 }
 0x38c   : > { %2551 = vpow2.f32 %v1330_v48  ;;  %v1224_v62 = vsub.f32 %v3368_v51, %v1153_v59  ;;  %v1225_v1 = vsub.f32 %v3370_v58, %v1153_v59  ;;  %v1427_v36 = vadd.f32 %v3587_v6, %v3585_v24 }
 0x38d   : > { %2553 = vpow2.f32 %v1332_v5  ;;  %v3897_v5 = vld [vmem:[#allocation4_spill] sm:$0xff] }
 0x38e   : > { %v3593_v52 = vpop.eup %2543  ;;  %v1334_v21 = vmul.f32 1.442695, %v1224_v62  ;;  %v1336_v27 = vmul.f32 1.442695, %v1225_v1  ;;  %1428 = vadd.xlane.f32.xlu0 %v1427_v36 }
 0x38f   : > { %v3595_v54 = vpop.eup %2545  ;;  %v1156_v10 = vpop.xlane.xlu1 %1155 }
 0x390   : > { %2555 = vpow2.f32 %v1334_v21  ;;  %v1226_v29 = vsub.f32 %v3374_v9, %v1156_v10  ;;  %v1227_v20 = vsub.f32 %v3895_v8, %v1156_v10  ;;  %v1430_v51 = vadd.f32 %v3595_v54, %v3593_v52  ;;  %v3900_v10 = vld [vmem:[#allocation5_spill] sm:$0xff]  ;;  %v3901_v8 = vld [vmem:[#allocation6_spill] sm:$0xff] }
 0x391   : > { %2557 = vpow2.f32 %v1336_v27 }
 0x392   : > { %v3601_v58 = vpop.eup %2547  ;;  %v1338_v35 = vmul.f32 1.442695, %v1226_v29  ;;  %v1340_v12 = vmul.f32 1.442695, %v1227_v20  ;;  %1431 = vadd.xlane.f32.xlu1 %v1430_v51 }
 0x393   : > { %v3603_v26 = vpop.eup %2549  ;;  %v1159_v42 = vpop.xlane.xlu1 %1158 }
 0x394   : > { %2559 = vpow2.f32 %v1338_v35  ;;  %v1228_v48 = vsub.f32 %v3896_v18, %v1159_v42  ;;  %v1229_v59 = vsub.f32 %v3897_v5, %v1159_v42  ;;  %v1433_v9 = vadd.f32 %v3603_v26, %v3601_v58  ;;  %v3904_v5 = vld [vmem:[#allocation7_spill] sm:$0xff] }
 0x395   : > { %2561 = vpow2.f32 %v1340_v12 }
 0x396   : > { %v3609_v62 = vpop.eup %2551  ;;  %v1342_v1 = vmul.f32 1.442695, %v1228_v48  ;;  %v1344_v36 = vmul.f32 1.442695, %v1229_v59  ;;  %1434 = vadd.xlane.f32.xlu0 %v1433_v9  ;;  %v3905_v9 = vld [vmem:[#allocation8_spill] sm:$0xff] }
 0x397   : > { %3898 = vst [vmem:[#allocation2_spill] sm:$0xff] %v3609_v62  ;;  %v3611_v21 = vpop.eup %2553  ;;  %v1162_v27 = vpop.xlane.xlu1 %1161 }
 0x398   : > { %3899 = vst [vmem:[#allocation3_spill] sm:$0xff] %v3611_v21  ;;  %2563 = vpow2.f32 %v1342_v1  ;;  %v1230_v29 = vsub.f32 %v3900_v10, %v1162_v27  ;;  %v1231_v20 = vsub.f32 %v3901_v8, %v1162_v27  ;;  %v1436_v51 = vadd.f32 %v3611_v21, %v3609_v62 }
 0x399   : > { %2565 = vpow2.f32 %v1344_v36 }
 0x39a   : > { %v3617_v35 = vpop.eup %2555  ;;  %v1346_v12 = vmul.f32 1.442695, %v1230_v29  ;;  %v1348_v42 = vmul.f32 1.442695, %v1231_v20  ;;  %1437 = vadd.xlane.f32.xlu1 %v1436_v51  ;;  %v3908_v51 = vld [vmem:[#allocation9_spill] sm:$0xff] }
 0x39b   : > { %3902 = vst [vmem:[#allocation4_spill] sm:$0xff] %v3617_v35  ;;  %v3619_v18 = vpop.eup %2557  ;;  %v1165_v48 = vpop.xlane.xlu1 %1164 }
 0x39c   : > { %3903 = vst [vmem:[#allocation5_spill] sm:$0xff] %v3619_v18  ;;  %2567 = vpow2.f32 %v1346_v12  ;;  %v1232_v59 = vsub.f32 %v3904_v5, %v1165_v48  ;;  %v1233_v1 = vsub.f32 %v3905_v9, %v1165_v48  ;;  %v1439_v27 = vadd.f32 %v3619_v18, %v3617_v35  ;;  %v3909_v12 = vld [vmem:[#allocation10_spill] sm:$0xff] }
 0x39d   : > { %2569 = vpow2.f32 %v1348_v42 }
 0x39e   : > { %v3625_v10 = vpop.eup %2559  ;;  %v1350_v36 = vmul.f32 1.442695, %v1232_v59  ;;  %v1352_v8 = vmul.f32 1.442695, %v1233_v1  ;;  %1440 = vadd.xlane.f32.xlu0 %v1439_v27  ;;  %v3910_v27 = vld [vmem:[#allocation11_spill] sm:$0xff] }
 0x39f   : > { %3906 = vst [vmem:[#allocation6_spill] sm:$0xff] %v3625_v10  ;;  %v3627_v29 = vpop.eup %2561  ;;  %v1168_v20 = vpop.xlane.xlu1 %1167 }
 0x3a0   : > { %3907 = vst [vmem:[#allocation7_spill] sm:$0xff] %v3627_v29  ;;  %2571 = vpow2.f32 %v1350_v36  ;;  %v1234_v62 = vsub.f32 %v3908_v51, %v1168_v20  ;;  %v1235_v21 = vsub.f32 %v3909_v12, %v1168_v20  ;;  %v1442_v48 = vadd.f32 %v3627_v29, %v3625_v10  ;;  %v3911_v36 = vld [vmem:[#allocation12_spill] sm:$0xff] }
 0x3a1   : > { %2573 = vpow2.f32 %v1352_v8 }
 0x3a2   : > { %v3633_v5 = vpop.eup %2563  ;;  %v1354_v42 = vmul.f32 1.442695, %v1234_v62  ;;  %v1356_v9 = vmul.f32 1.442695, %v1235_v21  ;;  %1443 = vadd.xlane.f32.xlu1 %v1442_v48  ;;  %v3912_v48 = vld [vmem:[#allocation13_spill] sm:$0xff] }
 0x3a3   : > { %v3635_v59 = vpop.eup %2565  ;;  %v1171_v1 = vpop.xlane.xlu1 %1170 }
 0x3a4   : > { %2575 = vpow2.f32 %v1354_v42  ;;  %v1236_v35 = vsub.f32 %v3910_v27, %v1171_v1  ;;  %v1237_v18 = vsub.f32 %v3911_v36, %v1171_v1  ;;  %v1445_v20 = vadd.f32 %v3635_v59, %v3633_v5  ;;  %v3913_v42 = vld [vmem:[#allocation14_spill] sm:$0xff] }
 0x3a5   : > { %2577 = vpow2.f32 %v1356_v9 }
 0x3a6   : > { %v3641_v51 = vpop.eup %2567  ;;  %v1358_v8 = vmul.f32 1.442695, %v1236_v35  ;;  %v1360_v12 = vmul.f32 1.442695, %v1237_v18  ;;  %1446 = vadd.xlane.f32.xlu0 %v1445_v20 }
 0x3a7   : > { %v3643_v62 = vpop.eup %2569  ;;  %v1174_v21 = vpop.xlane.xlu1 %1173 }
 0x3a8   : > { %2579 = vpow2.f32 %v1358_v8  ;;  %v1238_v10 = vsub.f32 %v3912_v48, %v1174_v21  ;;  %v1239_v29 = vsub.f32 %v3913_v42, %v1174_v21  ;;  %v1448_v1 = vadd.f32 %v3643_v62, %v3641_v51 }
 0x3a9   : > { %2581 = vpow2.f32 %v1360_v12 }
 0x3aa   : > { %v3649_v27 = vpop.eup %2571  ;;  %v1362_v9 = vmul.f32 1.442695, %v1238_v10  ;;  %v1364_v36 = vmul.f32 1.442695, %v1239_v29  ;;  %1449 = vadd.xlane.f32.xlu1 %v1448_v1 }
 0x3ab   : > { %v3651_v35 = vpop.eup %2573 }
 0x3ac   : > { %2583 = vpow2.f32 %v1362_v9  ;;  %v1451_v18 = vadd.f32 %v3651_v35, %v3649_v27 }
 0x3ad   : > { %2585 = vpow2.f32 %v1364_v36 }
 0x3ae   : > { %v3655_v20 = vpop.eup %2575  ;;  %1452 = vadd.xlane.f32.xlu0 %v1451_v18 }
 0x3af   : > { %3914 = vst [vmem:[#allocation8_spill] sm:$0xff] %v3655_v20  ;;  %v3657_v8 = vpop.eup %2577 }
 0x3b0   : > { %3915 = vst [vmem:[#allocation9_spill] sm:$0xff] %v3657_v8  ;;  %v1454_v12 = vadd.f32 %v3657_v8, %v3655_v20 }
 0x3b2   : > { %v3661_v21 = vpop.eup %2579  ;;  %1455 = vadd.xlane.f32.xlu1 %v1454_v12 }
 0x3b3   : > { %3916 = vst [vmem:[#allocation10_spill] sm:$0xff] %v3661_v21  ;;  %v3663_v10 = vpop.eup %2581 }
 0x3b4   : > { %3917 = vst [vmem:[#allocation11_spill] sm:$0xff] %v3663_v10  ;;  %v1457_v29 = vadd.f32 %v3663_v10, %v3661_v21 }
 0x3b6   : > { %v3667_v48 = vpop.eup %2583  ;;  %1458 = vadd.xlane.f32.xlu0 %v1457_v29 }
 0x3b7   : > { %3918 = vst [vmem:[#allocation12_spill] sm:$0xff] %v3667_v48  ;;  %v3669_v42 = vpop.eup %2585 }
 0x3b8   : > { %v1460_v1 = vadd.f32 %v3669_v42, %v3667_v48 }
 0x3ba   : > { %1461 = vadd.xlane.f32.xlu1 %v1460_v1 }
 0x3cf   : > { %v1372_v9 = vpop.xlane.xlu0 %1371 }
 0x3d0   : > { %2587 = vrcp.f32 %v1372_v9 }
 0x3d3   : > { %v1375_v36 = vpop.xlane.xlu0 %1374 }
 0x3d4   : > { %2589 = vrcp.f32 %v1375_v36 }
 0x3d7   : > { %v1378_v18 = vpop.xlane.xlu0 %1377 }
 0x3d8   : > { %2591 = vrcp.f32 %v1378_v18 }
 0x3da   : > { %v2588_v12 = vpop.eup %2587 }
 0x3db   : > { %v1498_v20 = vmul.f32 %v2588_v12, %v3430_v28  ;;  %v1381_v8 = vpop.xlane.xlu0 %1380  ;;  %v1499_v21 = vmul.f32 %v2588_v12, %v3432_v2 }
 0x3dc   : > { %2593 = vrcp.f32 %v1381_v8 }
 0x3dd   : > { %1626 = vmatprep.mubr.f32.mxu0 %v1499_v21 }
 0x3de   : > { %v2590_v29 = vpop.eup %2589  ;;  %1627 = vmatmul.mubr.f32.vlgmr.msra.gmra.mrb[32].mxu0 %v1498_v20 }
 0x3df   : > { %v1384_v10 = vpop.xlane.xlu0 %1383  ;;  %v1501_v48 = vmul.f32 %v2590_v29, %v3440_v25  ;;  %v1500_v1 = vmul.f32 %v2590_v29, %v3438_v40 }
 0x3e0   : > { %2595 = vrcp.f32 %v1384_v10 }
 0x3e1   : > { %1631 = vmatprep.mubr.f32.mxu0 %v1501_v48 }
 0x3e2   : > { %v2592_v9 = vpop.eup %2591  ;;  %1632 = vmatmul.mubr.f32.gmra.mrb[34].mxu0 %v1500_v1 }
 0x3e3   : > { %v1387_v36 = vpop.xlane.xlu0 %1386  ;;  %v1503_v18 = vmul.f32 %v2592_v9, %v3448_v22  ;;  %v1502_v28 = vmul.f32 %v2592_v9, %v3446_v39 }
 0x3e4   : > { %2597 = vrcp.f32 %v1387_v36 }
 0x3e5   : > { %1636 = vmatprep.mubr.f32.mxu0 %v1503_v18 }
 0x3e6   : > { %v2594_v2 = vpop.eup %2593  ;;  %1637 = vmatmul.mubr.f32.gmra.mrb[36].mxu0 %v1502_v28 }
 0x3e7   : > { %v1390_v8 = vpop.xlane.xlu0 %1389  ;;  %v1505_v20 = vmul.f32 %v2594_v2, %v3456_v60  ;;  %v1504_v25 = vmul.f32 %v2594_v2, %v3454_v46 }
 0x3e8   : > { %2599 = vrcp.f32 %v1390_v8 }
 0x3e9   : > { %1641 = vmatprep.mubr.f32.mxu0 %v1505_v20 }
 0x3ea   : > { %v2596_v40 = vpop.eup %2595  ;;  %1642 = vmatmul.mubr.f32.gmra.mrb[38].mxu0 %v1504_v25 }
 0x3eb   : > { %v1393_v21 = vpop.xlane.xlu0 %1392  ;;  %v1507_v10 = vmul.f32 %v2596_v40, %v3464_v16  ;;  %v1506_v22 = vmul.f32 %v2596_v40, %v3462_v56 }
 0x3ec   : > { %2601 = vrcp.f32 %v1393_v21 }
 0x3ed   : > { %1646 = vmatprep.mubr.f32.mxu0 %v1507_v10 }
 0x3ee   : > { %v2598_v39 = vpop.eup %2597  ;;  %1647 = vmatmul.mubr.f32.gmra.mrb[40].mxu0 %v1506_v22 }
 0x3ef   : > { %v1396_v48 = vpop.xlane.xlu1 %1395  ;;  %v1177_v12 = vpop.xlane.xlu0 %1176  ;;  %v1509_v29 = vmul.f32 %v2598_v39, %v3472_v45  ;;  %v1508_v60 = vmul.f32 %v2598_v39, %v3470_v63 }
 0x3f0   : > { %2603 = vrcp.f32 %v1396_v48  ;;  %v1240_v46 = vsub.f32 %v3416_v50, %v1177_v12  ;;  %v1241_v1 = vsub.f32 %v3418_v31, %v1177_v12 }
 0x3f1   : > { %1651 = vmatprep.mubr.f32.mxu0 %v1509_v29 }
 0x3f2   : > { %v2600_v9 = vpop.eup %2599  ;;  %v1366_v16 = vmul.f32 1.442695, %v1240_v46  ;;  %v1368_v36 = vmul.f32 1.442695, %v1241_v1  ;;  %1652 = vmatmul.mubr.f32.gmra.mrb[42].mxu0 %v1508_v60 }
 0x3f3   : > { %v1399_v56 = vpop.xlane.xlu0 %1398  ;;  %v1511_v18 = vmul.f32 %v2600_v9, %v3480_v34  ;;  %v1510_v28 = vmul.f32 %v2600_v9, %v3478_v7 }
 0x3f4   : > { %2605 = vpow2.f32 %v1366_v16 }
 0x3f5   : > { %2607 = vpow2.f32 %v1368_v36  ;;  %1656 = vmatprep.mubr.f32.mxu0 %v1511_v18 }
 0x3f6   : > { %v2602_v45 = vpop.eup %2601  ;;  %2609 = vrcp.f32 %v1399_v56  ;;  %1657 = vmatmul.mubr.f32.gmra.mrb[44].mxu0 %v1510_v28 }
 0x3f7   : > { %v1402_v63 = vpop.xlane.xlu1 %1401  ;;  %v1513_v50 = vmul.f32 %v2602_v45, %v3488_v41  ;;  %v1512_v31 = vmul.f32 %v2602_v45, %v3486_v14 }
 0x3f8   : > { %2611 = vrcp.f32 %v1402_v63 }
 0x3f9   : > { %1661 = vmatprep.mubr.f32.mxu0 %v1513_v50 }
 0x3fa   : > { %v2604_v2 = vpop.eup %2603  ;;  %1662 = vmatmul.mubr.f32.gmra.mrb[46].mxu0 %v1512_v31 }
 0x3fb   : > { %v1405_v8 = vpop.xlane.xlu0 %1404  ;;  %v1515_v34 = vmul.f32 %v2604_v2, %v3496_v13  ;;  %v1514_v7 = vmul.f32 %v2604_v2, %v3494_v23 }
 0x3fc   : > { %2613 = vrcp.f32 %v1405_v8 }
 0x3fd   : > { %1666 = vmatprep.mubr.f32.mxu0 %v1515_v34 }
 0x3fe   : > { %v3693_v20 = vpop.eup %2605  ;;  %1667 = vmatmul.mubr.f32.gmra.mrb[48].mxu0 %v1514_v7 }
 0x3ff   : > { %v3695_v25 = vpop.eup %2607  ;;  %v1408_v40 = vpop.xlane.xlu1 %1407 }
 0x400   : > { %v2610_v41 = vpop.eup %2609  ;;  %2615 = vrcp.f32 %v1408_v40  ;;  %v1463_v14 = vadd.f32 %v3695_v25, %v3693_v20 }
 0x401   : > { %v1517_v21 = vmul.f32 %v2610_v41, %v3507_v17  ;;  %v1516_v10 = vmul.f32 %v2610_v41, %v3502_v32 }
 0x402   : > { %v2612_v13 = vpop.eup %2611  ;;  %1464 = vadd.xlane.f32.xlu0 %v1463_v14 }
 0x403   : > { %1671 = vmatprep.mubr.f32.mxu0 %v1517_v21  ;;  %v1411_v23 = vpop.xlane.xlu0 %1410  ;;  %v1519_v22 = vmul.f32 %v2612_v13, %v3515_v57  ;;  %v1518_v39 = vmul.f32 %v2612_v13, %v3513_v47 }
 0x404   : > { %1672 = vmatmul.mubr.f32.gmra.mrb[50].mxu0 %v1516_v10  ;;  %2617 = vrcp.f32 %v1411_v23  ;;  %v3919_v10 = vld [vmem:[#allocation3_spill] sm:$0xff] }
 0x405   : > { %1676 = vmatprep.mubr.f32.mxu0 %v1519_v22 }
 0x406   : > { %v2614_v48 = vpop.eup %2613 }
 0x407   : > { %v1414_v12 = vpop.xlane.xlu1 %1413  ;;  %v1521_v29 = vmul.f32 %v2614_v48, %v3523_v43  ;;  %v1520_v17 = vmul.f32 %v2614_v48, %v3521_v0 }
 0x408   : > { %1677 = vmatmul.mubr.f32.gmra.mrb[52].mxu0 %v1518_v39  ;;  %2619 = vrcp.f32 %v1414_v12  ;;  %v3921_v39 = vld [vmem:[#allocation5_spill] sm:$0xff] }
 0x409   : > { %1681 = vmatprep.mubr.f32.mxu0 %v1521_v29 }
 0x40a   : > { %v2616_v32 = vpop.eup %2615 }
 0x40b   : > { %v1417_v60 = vpop.xlane.xlu0 %1416  ;;  %v1523_v46 = vmul.f32 %v2616_v32, %v3531_v53  ;;  %v1522_v57 = vmul.f32 %v2616_v32, %v3529_v15 }
 0x40c   : > { %1682 = vmatmul.mubr.f32.gmra.mrb[54].mxu0 %v1520_v17  ;;  %2621 = vrcp.f32 %v1417_v60  ;;  %v3923_v17 = vld [vmem:[#allocation7_spill] sm:$0xff]  ;;  %v3924_v60 = vld [vmem:[#allocation6_spill] sm:$0xff] }
 0x40d   : > { %1686 = vmatprep.mubr.f32.mxu0 %v1523_v46 }
 0x40e   : > { %v2618_v47 = vpop.eup %2617 }
 0x40f   : > { %v1420_v1 = vpop.xlane.xlu1 %1419  ;;  %v1525_v9 = vmul.f32 %v2618_v47, %v3539_v61  ;;  %v1524_v43 = vmul.f32 %v2618_v47, %v3537_v33 }
 0x410   : > { %1687 = vmatmul.mubr.f32.gmra.mrb[56].mxu0 %v1522_v57  ;;  %2623 = vrcp.f32 %v1420_v1 }
 0x411   : > { %1691 = vmatprep.mubr.f32.mxu0 %v1525_v9 }
 0x412   : > { %v2620_v0 = vpop.eup %2619 }
 0x413   : > { %v1423_v16 = vpop.xlane.xlu0 %1422  ;;  %v1527_v36 = vmul.f32 %v2620_v0, %v3547_v4  ;;  %v1526_v53 = vmul.f32 %v2620_v0, %v3545_v37 }
 0x414   : > { %1692 = vmatmul.mubr.f32.gmra.mrb[58].mxu0 %v1524_v43  ;;  %2625 = vrcp.f32 %v1423_v16 }
 0x415   : > { %1696 = vmatprep.mubr.f32.mxu0 %v1527_v36 }
 0x416   : > { %v2622_v15 = vpop.eup %2621 }
 0x417   : > { %v1426_v56 = vpop.xlane.xlu1 %1425  ;;  %v1529_v18 = vmul.f32 %v2622_v15, %v3555_v44  ;;  %v1528_v61 = vmul.f32 %v2622_v15, %v3553_v38 }
 0x418   : > { %1697 = vmatmul.mubr.f32.gmra.mrb[60].mxu0 %v1526_v53  ;;  %2627 = vrcp.f32 %v1426_v56 }
 0x419   : > { %1701 = vmatprep.mubr.f32.mxu0 %v1529_v18  ;;  %v3925_v18 = vld [vmem:[#allocation9_spill] sm:$0xff] }
 0x41a   : > { %v2624_v33 = vpop.eup %2623 }
 0x41b   : > { %v1429_v28 = vpop.xlane.xlu0 %1428  ;;  %v1531_v45 = vmul.f32 %v2624_v33, %v3563_v19  ;;  %v1530_v4 = vmul.f32 %v2624_v33, %v3561_v55  ;;  %v3926_v33 = vld [vmem:[#allocation8_spill] sm:$0xff] }
 0x41c   : > { %1702 = vmatmul.mubr.f32.gmra.mrb[62].mxu0 %v1528_v61  ;;  %2629 = vrcp.f32 %v1429_v28 }
 0x41d   : > { %1706 = vmatprep.mubr.f32.mxu0 %v1531_v45  ;;  %v3927_v45 = vld [vmem:[#allocation11_spill] sm:$0xff] }
 0x41e   : > { %v2626_v37 = vpop.eup %2625 }
 0x41f   : > { %v1432_v63 = vpop.xlane.xlu1 %1431  ;;  %v1533_v50 = vmul.f32 %v2626_v37, %v3571_v30  ;;  %v1532_v44 = vmul.f32 %v2626_v37, %v3569_v3 }
 0x420   : > { %1707 = vmatmul.mubr.f32.gmra.mrb[64].mxu0 %v1530_v4  ;;  %2631 = vrcp.f32 %v1432_v63  ;;  %v3928_v4 = vld [vmem:[#allocation10_spill] sm:$0xff] }
 0x421   : > { %1711 = vmatprep.mubr.f32.mxu0 %v1533_v50 }
 0x422   : > { %v2628_v38 = vpop.eup %2627 }
 0x423   : > { %v1435_v31 = vpop.xlane.xlu0 %1434  ;;  %v1535_v2 = vmul.f32 %v2628_v38, %v3579_v49  ;;  %v1534_v19 = vmul.f32 %v2628_v38, %v3577_v11 }
 0x424   : > { %1712 = vmatmul.mubr.f32.gmra.mrb[66].mxu0 %v1532_v44  ;;  %2633 = vrcp.f32 %v1435_v31 }
 0x425   : > { %1716 = vmatprep.mubr.f32.mxu0 %v1535_v2 }
 0x426   : > { %v2630_v55 = vpop.eup %2629 }
 0x427   : > { %v1438_v8 = vpop.xlane.xlu1 %1437  ;;  %v1537_v34 = vmul.f32 %v2630_v55, %v3587_v6  ;;  %v1536_v30 = vmul.f32 %v2630_v55, %v3585_v24 }
 0x428   : > { %1717 = vmatmul.mubr.f32.gmra.mrb[68].mxu0 %v1534_v19  ;;  %2635 = vrcp.f32 %v1438_v8  ;;  %v2655_v8 = vld [vmem:[%s2746_s25] sm:$0xff] }
 0x429   : > { %1721 = vmatprep.mubr.f32.mxu0 %v1537_v34 }
 0x42a   : > { %v2632_v3 = vpop.eup %2631 }
 0x42b   : > { %v1441_v7 = vpop.xlane.xlu0 %1440  ;;  %v1539_v40 = vmul.f32 %v2632_v3, %v3595_v54  ;;  %v1538_v49 = vmul.f32 %v2632_v3, %v3593_v52  ;;  %v3920_v54 = vld [vmem:[#allocation2_spill] sm:$0xff]  ;;  %v2656_v3 = vld [vmem:[%s2746_s25 + $0x8] sm:$0xff] }
 0x42c   : > { %1722 = vmatmul.mubr.f32.gmra.mrb[70].mxu0 %v1536_v30  ;;  %2637 = vrcp.f32 %v1441_v7 }
 0x42d   : > { %1726 = vmatprep.mubr.f32.mxu0 %v1539_v40 }
 0x42e   : > { %v2634_v11 = vpop.eup %2633 }
 0x42f   : > { %v1444_v41 = vpop.xlane.xlu1 %1443  ;;  %v1541_v14 = vmul.f32 %v2634_v11, %v3603_v26  ;;  %v1540_v6 = vmul.f32 %v2634_v11, %v3601_v58  ;;  %v3922_v26 = vld [vmem:[#allocation4_spill] sm:$0xff] }
 0x430   : > { %1727 = vmatmul.mubr.f32.gmra.mrb[72].mxu0 %v1538_v49  ;;  %2639 = vrcp.f32 %v1444_v41  ;;  %v2657_v41 = vld [vmem:[%s2746_s25 + $0x10] sm:$0xff] }
 0x431   : > { %1731 = vmatprep.mubr.f32.mxu0 %v1541_v14 }
 0x432   : > { %v2636_v24 = vpop.eup %2635 }
 0x433   : > { %v1447_v21 = vpop.xlane.xlu0 %1446  ;;  %v1543_v13 = vmul.f32 %v2636_v24, %v3919_v10  ;;  %v1542_v23 = vmul.f32 %v2636_v24, %v3920_v54  ;;  %v2658_v10 = vld [vmem:[%s2746_s25 + $0x18] sm:$0xff] }
 0x434   : > { %1732 = vmatmul.mubr.f32.gmra.mrb[74].mxu0 %v1540_v6  ;;  %2641 = vrcp.f32 %v1447_v21 }
 0x435   : > { %1736 = vmatprep.mubr.f32.mxu0 %v1543_v13 }
 0x436   : > { %v2638_v52 = vpop.eup %2637 }
 0x437   : > { %v1450_v22 = vpop.xlane.xlu1 %1449  ;;  %v1545_v48 = vmul.f32 %v2638_v52, %v3921_v39  ;;  %v1544_v12 = vmul.f32 %v2638_v52, %v3922_v26 }
 0x438   : > { %1737 = vmatmul.mubr.f32.gmra.mrb[76].mxu0 %v1542_v23  ;;  %2643 = vrcp.f32 %v1450_v22  ;;  %v2659_v22 = vld [vmem:[%s2746_s25 + $0x20] sm:$0xff] }
 0x439   : > { %1741 = vmatprep.mubr.f32.mxu0 %v1545_v48 }
 0x43a   : > { %v2640_v58 = vpop.eup %2639 }
 0x43b   : > { %v1453_v29 = vpop.xlane.xlu0 %1452  ;;  %v1547_v32 = vmul.f32 %v2640_v58, %v3923_v17  ;;  %v1546_v46 = vmul.f32 %v2640_v58, %v3924_v60  ;;  %v2660_v58 = vld [vmem:[%s2746_s25 + $0x28] sm:$0xff] }
 0x43c   : > { %1742 = vmatmul.mubr.f32.gmra.mrb[78].mxu0 %v1544_v12  ;;  %2645 = vrcp.f32 %v1453_v29 }
 0x43d   : > { %1746 = vmatprep.mubr.f32.mxu0 %v1547_v32 }
 0x43e   : > { %v2642_v57 = vpop.eup %2641 }
 0x43f   : > { %v1456_v47 = vpop.xlane.xlu1 %1455  ;;  %v1549_v1 = vmul.f32 %v2642_v57, %v3635_v59  ;;  %v1548_v9 = vmul.f32 %v2642_v57, %v3633_v5 }
 0x440   : > { %1747 = vmatmul.mubr.f32.gmra.mrb[80].mxu0 %v1546_v46  ;;  %2647 = vrcp.f32 %v1456_v47  ;;  %v2661_v46 = vld [vmem:[%s2746_s25 + $0x30] sm:$0xff] }
 0x441   : > { %1751 = vmatprep.mubr.f32.mxu0 %v1549_v1 }
 0x442   : > { %v2644_v43 = vpop.eup %2643 }
 0x443   : > { %v1459_v0 = vpop.xlane.xlu0 %1458  ;;  %v1551_v16 = vmul.f32 %v2644_v43, %v3643_v62  ;;  %v1550_v36 = vmul.f32 %v2644_v43, %v3641_v51  ;;  %v2662_v43 = vld [vmem:[%s2746_s25 + $0x38] sm:$0xff] }
 0x444   : > { %1752 = vmatmul.mubr.f32.gmra.mrb[82].mxu0 %v1548_v9  ;;  %2649 = vrcp.f32 %v1459_v0 }
 0x445   : > { %1756 = vmatprep.mubr.f32.mxu0 %v1551_v16 }
 0x446   : > { %v2646_v53 = vpop.eup %2645 }
 0x447   : > { %v1462_v15 = vpop.xlane.xlu1 %1461  ;;  %v1553_v56 = vmul.f32 %v2646_v53, %v3651_v35  ;;  %v1552_v59 = vmul.f32 %v2646_v53, %v3649_v27  ;;  %v3929_v27 = vld [vmem:[#allocation12_spill] sm:$0xff] }
 0x448   : > { %1757 = vmatmul.mubr.f32.gmra.mrb[84].mxu0 %v1550_v36  ;;  %2651 = vrcp.f32 %v1462_v15  ;;  %v2663_v15 = vld [vmem:[%s2746_s25 + $0x40] sm:$0xff] }
 0x449   : > { %1761 = vmatprep.mubr.f32.mxu0 %v1553_v56 }
 0x44a   : > { %v2648_v5 = vpop.eup %2647 }
 0x44b   : > { %v1555_v61 = vmul.f32 %v2648_v5, %v3925_v18  ;;  %v1554_v62 = vmul.f32 %v2648_v5, %v3926_v33 }
 0x44c   : > { %1762 = vmatmul.mubr.f32.gmra.mrb[86].mxu0 %v1552_v59 }
 0x44d   : > { %1766 = vmatprep.mubr.f32.mxu0 %v1555_v61  ;;  %v2664_v61 = vld [vmem:[%s2746_s25 + $0x48] sm:$0xff] }
 0x44e   : > { %v2650_v28 = vpop.eup %2649 }
 0x44f   : > { %v1557_v51 = vmul.f32 %v2650_v28, %v3927_v45  ;;  %v1556_v37 = vmul.f32 %v2650_v28, %v3928_v4 }
 0x450   : > { %1767 = vmatmul.mubr.f32.gmra.mrb[88].mxu0 %v1554_v62 }
 0x451   : > { %1771 = vmatprep.mubr.f32.mxu0 %v1557_v51  ;;  %v2665_v51 = vld [vmem:[%s2746_s25 + $0x50] sm:$0xff] }
 0x452   : > { %v2652_v35 = vpop.eup %2651 }
 0x453   : > { %v1559_v63 = vmul.f32 %v2652_v35, %v3669_v42  ;;  %v1558_v50 = vmul.f32 %v2652_v35, %v3929_v27  ;;  %v2666_v27 = vld [vmem:[%s2746_s25 + $0x58] sm:$0xff] }
 0x454   : > { %1772 = vmatmul.mubr.f32.gmra.mrb[90].mxu0 %v1556_v37 }
 0x455   : > { %1776 = vmatprep.mubr.f32.mxu0 %v1559_v63 }
 0x458   : > { %1777 = vmatmul.mubr.f32.gmra.mrb[92].mxu0 %v1558_v50 }
 0x48f   : > { %v1465_v44 = vpop.xlane.xlu0 %1464 }
 0x490   : > { %2653 = vrcp.f32 %v1465_v44 }
 0x49a   : > { %v2654_v38 = vpop.eup %2653 }
 0x49b   : > { %v1560_v31 = vmul.f32 %v2654_v38, %v3693_v20  ;;  %v1561_v2 = vmul.f32 %v2654_v38, %v3695_v25 }
 0x49d   : > { %1781 = vmatprep.mubr.f32.mxu1 %v1561_v2  ;;  %v2667_v2 = vld [vmem:[%s2746_s25 + $0x60] sm:$0xff] }
 0x49e   : > { %1782 = vmatmul.mubr.f32.vlgmr.msra.gmra.mrb[64].mxu1 %v1560_v31 }
 0x4b1   : > { %v1628_v19 = vpop.f32.mrb[32].mxu0 }
 0x4b2   : > { %v1787_v55 = vmul.f32 0.5, %v1628_v19  ;;  %v1630_v42 = vpop.f32.mrb[33].mxu0 }
 0x4b4   : > { %v1819_v34 = vadd.f32 %v2655_v8, %v1787_v55 }
 0x4b5   : > { %v1633_v20 = vpop.f32.mrb[34].mxu0 }
 0x4b6   : > { %1851 = vst.msk [vmem:[%s3750_s5] sm:$0xff] %vm214_vm0, %v1819_v34  ;;  %v1788_v25 = vmul.f32 0.5, %v1633_v20  ;;  %v1635_v30 = vpop.f32.mrb[35].mxu0  ;;  %v2668_v34 = vld [vmem:[%s2746_s25 + $0x68] sm:$0xff] }
 0x4b8   : > { %v1820_v7 = vadd.f32 %v2656_v3, %v1788_v25 }
 0x4b9   : > { %v1638_v40 = vpop.f32.mrb[36].mxu0 }
 0x4ba   : > { %1852 = vst.msk [vmem:[%s3750_s5 + $0x8] sm:$0xff] %vm214_vm0, %v1820_v7  ;;  %v1789_v49 = vmul.f32 0.5, %v1638_v40  ;;  %v1640_v11 = vpop.f32.mrb[37].mxu0  ;;  %v2669_v7 = vld [vmem:[%s2746_s25 + $0x70] sm:$0xff] }
 0x4bc   : > { %v1821_v14 = vadd.f32 %v2657_v41, %v1789_v49 }
 0x4bd   : > { %v1643_v6 = vpop.f32.mrb[38].mxu0 }
 0x4be   : > { %1853 = vst.msk [vmem:[%s3750_s5 + $0x10] sm:$0xff] %vm214_vm0, %v1821_v14  ;;  %v1790_v24 = vmul.f32 0.5, %v1643_v6  ;;  %v1645_v21 = vpop.f32.mrb[39].mxu0  ;;  %v2670_v14 = vld [vmem:[%s2746_s25 + $0x78] sm:$0xff] }
 0x4c0   : > { %v1822_v13 = vadd.f32 %v2658_v10, %v1790_v24 }
 0x4c1   : > { %v1648_v54 = vpop.f32.mrb[40].mxu0 }
 0x4c2   : > { %1854 = vst.msk [vmem:[%s3750_s5 + $0x18] sm:$0xff] %vm214_vm0, %v1822_v13  ;;  %v1791_v23 = vmul.f32 0.5, %v1648_v54  ;;  %v1650_v52 = vpop.f32.mrb[41].mxu0  ;;  %v2671_v13 = vld [vmem:[%s2746_s25 + $0x80] sm:$0xff] }
 0x4c4   : > { %v1823_v39 = vadd.f32 %v2659_v22, %v1791_v23 }
 0x4c5   : > { %v1653_v48 = vpop.f32.mrb[42].mxu0 }
 0x4c6   : > { %1855 = vst.msk [vmem:[%s3750_s5 + $0x20] sm:$0xff] %vm214_vm0, %v1823_v39  ;;  %v1792_v26 = vmul.f32 0.5, %v1653_v48  ;;  %v1655_v12 = vpop.f32.mrb[43].mxu0  ;;  %v2672_v39 = vld [vmem:[%s2746_s25 + $0x88] sm:$0xff] }
 0x4c8   : > { %v1824_v29 = vadd.f32 %v2660_v58, %v1792_v26 }
 0x4c9   : > { %v1658_v17 = vpop.f32.mrb[44].mxu0 }
 0x4ca   : > { %1856 = vst.msk [vmem:[%s3750_s5 + $0x28] sm:$0xff] %vm214_vm0, %v1824_v29  ;;  %v1793_v32 = vmul.f32 0.5, %v1658_v17  ;;  %v1660_v60 = vpop.f32.mrb[45].mxu0  ;;  %v2673_v29 = vld [vmem:[%s2746_s25 + $0x90] sm:$0xff] }
 0x4cc   : > { %v1825_v57 = vadd.f32 %v2661_v46, %v1793_v32 }
 0x4cd   : > { %v1663_v47 = vpop.f32.mrb[46].mxu0 }
 0x4ce   : > { %1857 = vst.msk [vmem:[%s3750_s5 + $0x30] sm:$0xff] %vm214_vm0, %v1825_v57  ;;  %v1794_v1 = vmul.f32 0.5, %v1663_v47  ;;  %v1665_v9 = vpop.f32.mrb[47].mxu0  ;;  %v2674_v57 = vld [vmem:[%s2746_s25 + $0x98] sm:$0xff] }
 0x4d0   : > { %v1826_v0 = vadd.f32 %v2662_v43, %v1794_v1 }
 0x4d1   : > { %v1668_v16 = vpop.f32.mrb[48].mxu0 }
 0x4d2   : > { %1858 = vst.msk [vmem:[%s3750_s5 + $0x38] sm:$0xff] %vm214_vm0, %v1826_v0  ;;  %v1795_v36 = vmul.f32 0.5, %v1668_v16  ;;  %v1670_v53 = vpop.f32.mrb[49].mxu0  ;;  %v2675_v0 = vld [vmem:[%s2746_s25 + $0xa0] sm:$0xff] }
 0x4d4   : > { %v1827_v56 = vadd.f32 %v2663_v15, %v1795_v36 }
 0x4d6   : > { %1859 = vst.msk [vmem:[%s3750_s5 + $0x40] sm:$0xff] %vm214_vm0, %v1827_v56  ;;  %v2676_v56 = vld [vmem:[%s2746_s25 + $0xa8] sm:$0xff] }
 0x4d7   : > { %v1673_v59 = vpop.f32.mrb[50].mxu0 }
 0x4d8   : > { %v1796_v5 = vmul.f32 0.5, %v1673_v59  ;;  %v1675_v18 = vpop.f32.mrb[51].mxu0 }
 0x4da   : > { %v1828_v33 = vadd.f32 %v2664_v61, %v1796_v5 }
 0x4db   : > { %v1678_v62 = vpop.f32.mrb[52].mxu0 }
 0x4dc   : > { %1860 = vst.msk [vmem:[%s3750_s5 + $0x48] sm:$0xff] %vm214_vm0, %v1828_v33  ;;  %v1797_v28 = vmul.f32 0.5, %v1678_v62  ;;  %v1680_v45 = vpop.f32.mrb[53].mxu0  ;;  %v2677_v33 = vld [vmem:[%s2746_s25 + $0xb0] sm:$0xff] }
 0x4de   : > { %v1829_v4 = vadd.f32 %v2665_v51, %v1797_v28 }
 0x4df   : > { %v1683_v37 = vpop.f32.mrb[54].mxu0 }
 0x4e0   : > { %1861 = vst.msk [vmem:[%s3750_s5 + $0x50] sm:$0xff] %vm214_vm0, %v1829_v4  ;;  %v1798_v35 = vmul.f32 0.5, %v1683_v37  ;;  %v1685_v63 = vpop.f32.mrb[55].mxu0  ;;  %v2678_v4 = vld [vmem:[%s2746_s25 + $0xb8] sm:$0xff] }
 0x4e2   : > { %v1830_v50 = vadd.f32 %v2666_v27, %v1798_v35 }
 0x4e3   : > { %v1688_v44 = vpop.f32.mrb[56].mxu0 }
 0x4e4   : > { %1862 = vst.msk [vmem:[%s3750_s5 + $0x58] sm:$0xff] %vm214_vm0, %v1830_v50  ;;  %v1799_v38 = vmul.f32 0.5, %v1688_v44  ;;  %v1690_v31 = vpop.f32.mrb[57].mxu0  ;;  %v2679_v50 = vld [vmem:[%s2746_s25 + $0xc0] sm:$0xff] }
 0x4e6   : > { %v1831_v19 = vadd.f32 %v2667_v2, %v1799_v38 }
 0x4e7   : > { %v1693_v55 = vpop.f32.mrb[58].mxu0 }
 0x4e8   : > { %1863 = vst.msk [vmem:[%s3750_s5 + $0x60] sm:$0xff] %vm214_vm0, %v1831_v19  ;;  %v1800_v42 = vmul.f32 0.5, %v1693_v55  ;;  %v1695_v8 = vpop.f32.mrb[59].mxu0  ;;  %v2680_v19 = vld [vmem:[%s2746_s25 + $0xc8] sm:$0xff] }
 0x4ea   : > { %v1832_v20 = vadd.f32 %v2668_v34, %v1800_v42 }
 0x4eb   : > { %v1698_v25 = vpop.f32.mrb[60].mxu0 }
 0x4ec   : > { %1864 = vst.msk [vmem:[%s3750_s5 + $0x68] sm:$0xff] %vm214_vm0, %v1832_v20  ;;  %v1801_v30 = vmul.f32 0.5, %v1698_v25  ;;  %v1700_v3 = vpop.f32.mrb[61].mxu0  ;;  %v2681_v20 = vld [vmem:[%s2746_s25 + $0xd0] sm:$0xff] }
 0x4ee   : > { %v1833_v40 = vadd.f32 %v2669_v7, %v1801_v30 }
 0x4ef   : > { %v1703_v49 = vpop.f32.mrb[62].mxu0 }
 0x4f0   : > { %1865 = vst.msk [vmem:[%s3750_s5 + $0x70] sm:$0xff] %vm214_vm0, %v1833_v40  ;;  %v1802_v11 = vmul.f32 0.5, %v1703_v49  ;;  %v1705_v41 = vpop.f32.mrb[63].mxu0  ;;  %v2682_v40 = vld [vmem:[%s2746_s25 + $0xd8] sm:$0xff] }
 0x4f2   : > { %v1834_v6 = vadd.f32 %v2670_v14, %v1802_v11 }
 0x4f3   : > { %v1708_v24 = vpop.f32.mrb[64].mxu0 }
 0x4f4   : > { %1866 = vst.msk [vmem:[%s3750_s5 + $0x78] sm:$0xff] %vm214_vm0, %v1834_v6  ;;  %v1803_v21 = vmul.f32 0.5, %v1708_v24  ;;  %v1710_v10 = vpop.f32.mrb[65].mxu0  ;;  %v2683_v6 = vld [vmem:[%s2746_s25 + $0xe0] sm:$0xff] }
 0x4f6   : > { %v1835_v54 = vadd.f32 %v2671_v13, %v1803_v21 }
 0x4f7   : > { %v1713_v23 = vpop.f32.mrb[66].mxu0 }
 0x4f8   : > { %1867 = vst.msk [vmem:[%s3750_s5 + $0x80] sm:$0xff] %vm214_vm0, %v1835_v54  ;;  %v1804_v52 = vmul.f32 0.5, %v1713_v23  ;;  %v1715_v22 = vpop.f32.mrb[67].mxu0  ;;  %v2684_v54 = vld [vmem:[%s2746_s25 + $0xe8] sm:$0xff] }
 0x4fa   : > { %v1836_v48 = vadd.f32 %v2672_v39, %v1804_v52 }
 0x4fb   : > { %v1718_v26 = vpop.f32.mrb[68].mxu0 }
 0x4fc   : > { %1868 = vst.msk [vmem:[%s3750_s5 + $0x88] sm:$0xff] %vm214_vm0, %v1836_v48  ;;  %v1805_v12 = vmul.f32 0.5, %v1718_v26  ;;  %v1720_v58 = vpop.f32.mrb[69].mxu0  ;;  %v2685_v48 = vld [vmem:[%s2746_s25 + $0xf0] sm:$0xff] }
 0x4fe   : > { %v1837_v17 = vadd.f32 %v2673_v29, %v1805_v12 }
 0x4ff   : > { %v1723_v32 = vpop.f32.mrb[70].mxu0 }
 0x500   : > { %1869 = vst.msk [vmem:[%s3750_s5 + $0x90] sm:$0xff] %vm214_vm0, %v1837_v17  ;;  %v1806_v60 = vmul.f32 0.5, %v1723_v32  ;;  %v1725_v46 = vpop.f32.mrb[71].mxu0  ;;  %v2686_v17 = vld [vmem:[%s2746_s25 + $0xf8] sm:$0xff] }
 0x502   : > { %v1838_v47 = vadd.f32 %v2674_v57, %v1806_v60 }
 0x503   : > { %v1728_v1 = vpop.f32.mrb[72].mxu0 }
 0x504   : > { %1870 = vst.msk [vmem:[%s3750_s5 + $0x98] sm:$0xff] %vm214_vm0, %v1838_v47  ;;  %v1807_v9 = vmul.f32 0.5, %v1728_v1  ;;  %v1730_v43 = vpop.f32.mrb[73].mxu0 }
 0x506   : > { %v1839_v16 = vadd.f32 %v2675_v0, %v1807_v9 }
 0x507   : > { %v1733_v36 = vpop.f32.mrb[74].mxu0 }
 0x508   : > { %1871 = vst.msk [vmem:[%s3750_s5 + $0xa0] sm:$0xff] %vm214_vm0, %v1839_v16  ;;  %v1808_v53 = vmul.f32 0.5, %v1733_v36  ;;  %v1735_v15 = vpop.f32.mrb[75].mxu0 }
 0x50a   : > { %v1840_v59 = vadd.f32 %v2676_v56, %v1808_v53 }
 0x50b   : > { %v1738_v5 = vpop.f32.mrb[76].mxu0 }
 0x50c   : > { %1872 = vst.msk [vmem:[%s3750_s5 + $0xa8] sm:$0xff] %vm214_vm0, %v1840_v59  ;;  %v1809_v18 = vmul.f32 0.5, %v1738_v5  ;;  %v1740_v61 = vpop.f32.mrb[77].mxu0 }
 0x50e   : > { %v1841_v62 = vadd.f32 %v2677_v33, %v1809_v18 }
 0x50f   : > { %v1743_v28 = vpop.f32.mrb[78].mxu0 }
 0x510   : > { %1873 = vst.msk [vmem:[%s3750_s5 + $0xb0] sm:$0xff] %vm214_vm0, %v1841_v62  ;;  %v1810_v45 = vmul.f32 0.5, %v1743_v28  ;;  %v1745_v51 = vpop.f32.mrb[79].mxu0 }
 0x512   : > { %v1842_v37 = vadd.f32 %v2678_v4, %v1810_v45 }
 0x513   : > { %v1748_v35 = vpop.f32.mrb[80].mxu0 }
 0x514   : > { %1874 = vst.msk [vmem:[%s3750_s5 + $0xb8] sm:$0xff] %vm214_vm0, %v1842_v37  ;;  %v1811_v63 = vmul.f32 0.5, %v1748_v35  ;;  %v1750_v27 = vpop.f32.mrb[81].mxu0 }
 0x516   : > { %v1843_v44 = vadd.f32 %v2679_v50, %v1811_v63 }
 0x517   : > { %v1753_v38 = vpop.f32.mrb[82].mxu0 }
 0x518   : > { %1875 = vst.msk [vmem:[%s3750_s5 + $0xc0] sm:$0xff] %vm214_vm0, %v1843_v44  ;;  %v1812_v31 = vmul.f32 0.5, %v1753_v38  ;;  %v1755_v2 = vpop.f32.mrb[83].mxu0 }
 0x51a   : > { %v1844_v55 = vadd.f32 %v2680_v19, %v1812_v31 }
 0x51b   : > { %v1758_v42 = vpop.f32.mrb[84].mxu0 }
 0x51c   : > { %1876 = vst.msk [vmem:[%s3750_s5 + $0xc8] sm:$0xff] %vm214_vm0, %v1844_v55  ;;  %v1813_v8 = vmul.f32 0.5, %v1758_v42  ;;  %v1760_v34 = vpop.f32.mrb[85].mxu0 }
 0x51e   : > { %v1845_v25 = vadd.f32 %v2681_v20, %v1813_v8 }
 0x51f   : > { %v1763_v30 = vpop.f32.mrb[86].mxu0 }
 0x520   : > { %1877 = vst.msk [vmem:[%s3750_s5 + $0xd0] sm:$0xff] %vm214_vm0, %v1845_v25  ;;  %v1814_v3 = vmul.f32 0.5, %v1763_v30  ;;  %v1765_v7 = vpop.f32.mrb[87].mxu0 }
 0x522   : > { %v1846_v49 = vadd.f32 %v2682_v40, %v1814_v3 }
 0x523   : > { %v1768_v11 = vpop.f32.mrb[88].mxu0 }
 0x524   : > { %1878 = vst.msk [vmem:[%s3750_s5 + $0xd8] sm:$0xff] %vm214_vm0, %v1846_v49  ;;  %v1815_v41 = vmul.f32 0.5, %v1768_v11  ;;  %v1770_v14 = vpop.f32.mrb[89].mxu0 }
 0x526   : > { %v1847_v24 = vadd.f32 %v2683_v6, %v1815_v41 }
 0x527   : > { %v1773_v21 = vpop.f32.mrb[90].mxu0 }
 0x528   : > { %1879 = vst.msk [vmem:[%s3750_s5 + $0xe0] sm:$0xff] %vm214_vm0, %v1847_v24  ;;  %v1816_v10 = vmul.f32 0.5, %v1773_v21  ;;  %v1775_v13 = vpop.f32.mrb[91].mxu0 }
 0x52a   : > { %v1848_v23 = vadd.f32 %v2684_v54, %v1816_v10 }
 0x52b   : > { %v1778_v52 = vpop.f32.mrb[92].mxu0 }
 0x52c   : > { %1880 = vst.msk [vmem:[%s3750_s5 + $0xe8] sm:$0xff] %vm214_vm0, %v1848_v23  ;;  %v1817_v22 = vmul.f32 0.5, %v1778_v52  ;;  %v1780_v39 = vpop.f32.mrb[93].mxu0 }
 0x52e   : > { %v1849_v26 = vadd.f32 %v2685_v48, %v1817_v22 }
 0x530   : > { %1881 = vst.msk [vmem:[%s3750_s5 + $0xf0] sm:$0xff] %vm214_vm0, %v1849_v26 }
 0x571   : > { %v1783_v12 = vpop.f32.mrb[64].mxu1 }
 0x572   : > { %v1818_v58 = vmul.f32 0.5, %v1783_v12  ;;  %v1785_v29 = vpop.f32.mrb[65].mxu1 }
 0x574   : > { %v1850_v32 = vadd.f32 %v2686_v17, %v1818_v58 }
 0x576   : > { %1882 = vst.msk [vmem:[%s3750_s5 + $0xf8] sm:$0xff] %vm214_vm0, %v1850_v32 }
 0x577 PF: > { %s13_s12 = sadd.s32 1, %s2693_s12  }
 0x578   : > { %p10_p4 = scmp.ge.s32.totalorder %s13_s12, 4  }
 0x57a   :  { %12 = sbr.rel (!%p10_p4) target bundleno = 1 (0x1), region = 62 }

</bundles_post_ra>
